<compile_context>
chip_gen: v5e
topology: v5e:2x2
jax: 0.10.0
libtpu: 0.0.40
codegen_flags: <defaults>
</compile_context>

<pallas_src>
import functools

import jax
import jax.numpy as jnp
from jax import lax
from jax.experimental import pallas as pl
from jax.experimental.pallas import tpu as pltpu

EPS = 1e-5
MATMUL_DTYPE = jnp.bfloat16          # MXU input dtype (f32 accumulation). Set jnp.float32 for bit-exact conv.
VMEM_LIMIT_BYTES = 32 * 1024 * 1024  # headroom for larger conv_dim; well under v7x's 64 MiB physical VMEM


# ----------------------------------------------------------------------------
# Fused Pallas kernel:  Y^T = W^T @ A^T  ->  BatchNorm  ->  (+residual)  ->  act
# ----------------------------------------------------------------------------
def _make_fused_kernel(m_total, use_bn, use_res, act):
    inv_m = 1.0 / float(m_total)

    def kernel(w_ref, a_ref, *rest):
        o_ref = rest[-1]
        # (Cout, K) @ (K, M) -> (Cout, M); M = N*Ho*Wo is the lane-dense axis.
        y = jnp.dot(w_ref[...], a_ref[...], preferred_element_type=jnp.float32)
        if use_bn:
            # Per-channel stats over the lane axis while the tile is resident.
            mean = jnp.sum(y, axis=1, keepdims=True) * inv_m
            yc = y - mean
            var = jnp.sum(yc * yc, axis=1, keepdims=True) * inv_m   # biased variance
            y = yc * lax.rsqrt(var + EPS)
        if use_res:
            y = y + rest[0][...]
        if act == "relu":
            y = jnp.maximum(y, 0.0)
        elif act == "tanh":
            y = jnp.tanh(y)
        o_ref[...] = y

    return kernel


def fused_matmul_bn_act(a_t, w_t, *, use_bn, act, residual=None):
    """a_t: (K, M) im2col^T;  w_t: (Cout, K);  residual: (Cout, M) f32 or None.

    Whole arrays are single VMEM blocks (no grid) -- the largest layer here is
    ~1 MiB, so one DMA in / one DMA out per layer is optimal.
    """
    k_dim, m = a_t.shape
    cout = w_t.shape[0]
    assert w_t.shape[1] == k_dim
    inputs = [w_t.astype(MATMUL_DTYPE), a_t.astype(MATMUL_DTYPE)]
    if residual is not None:
        assert residual.shape == (cout, m)
        inputs.append(residual.astype(jnp.float32))
    kernel = _make_fused_kernel(m, use_bn, residual is not None, act)
    return pl.pallas_call(
        kernel,
        out_shape=jax.ShapeDtypeStruct((cout, m), jnp.float32),
        compiler_params=pltpu.CompilerParams(vmem_limit_bytes=VMEM_LIMIT_BYTES),
    )(*inputs)


# ----------------------------------------------------------------------------
# XLA glue: channel-major im2col (A^T), weight reshapes, zero-stuffing
# ----------------------------------------------------------------------------
def _im2col_t(x_cf, k, stride, padding):
    """x_cf: (Cin, N, H, W) channel-major.  Returns A^T of shape (k*k*Cin, N*Ho*Wo)."""
    c, n, h, w = x_cf.shape
    xp = jnp.pad(x_cf, ((0, 0), (0, 0), (padding, padding), (padding, padding)))
    ho = (h + 2 * padding - k) // stride + 1
    wo = (w + 2 * padding - k) // stride + 1
    taps = [xp[:, :, ki:ki + stride * ho:stride, kj:kj + stride * wo:stride]
            for ki in range(k) for kj in range(k)]
    a_t = jnp.stack(taps, axis=0).reshape(k * k * c, n * ho * wo)   # row = tap*Cin + ci
    return a_t, (n, ho, wo)


def _conv_weight_t(w_conv):
    """PyTorch Conv2d weight (Cout, Cin, k, k) -> W^T (Cout, k*k*Cin), tap-major / channel-minor."""
    cout, cin, k, _ = w_conv.shape
    return jnp.transpose(w_conv, (0, 2, 3, 1)).reshape(cout, k * k * cin)


def _deconv_equivalent_conv_weight(w_deconv):
    """ConvTranspose2d weight (Cin, Cout, k, k) -> equivalent Conv2d weight (Cout, Cin, k, k)."""
    return jnp.transpose(w_deconv[:, :, ::-1, ::-1], (1, 0, 2, 3))


def _zero_stuff(x_cf, stride):
    c, n, h, w = x_cf.shape
    hs, ws = (h - 1) * stride + 1, (w - 1) * stride + 1
    xs = jnp.zeros((c, n, hs, ws), x_cf.dtype)
    return xs.at[:, :, ::stride, ::stride].set(x_cf)


def fused_layer(x_cf, w_pt, *, kernel_size, stride, padding, use_bn, act,
                residual=None, transposed=False):
    """One generator layer: (transposed-)conv + optional BN + optional residual + activation.

    x_cf / residual / return value are channel-major (C, N, H, W).
    """
    k = kernel_size
    if transposed:
        # ConvTranspose2d(k, s, p) == zero-stuff by s, then Conv2d(k, stride=1, pad=k-1-p)
        # with the spatially-flipped, channel-swapped kernel.
        w_conv = _deconv_equivalent_conv_weight(w_pt)
        x_cf = _zero_stuff(x_cf, stride)
        stride, padding = 1, k - 1 - padding
    else:
        w_conv = w_pt

    a_t, (n, ho, wo) = _im2col_t(x_cf, k, stride, padding)
    w_t = _conv_weight_t(w_conv)
    cout = w_t.shape[0]
    m = n * ho * wo

    # Pad Cout up to a multiple of 8 (sublanes) so the tiny 3-channel output layer
    # still presents a clean tile; padded rows are sliced off below.
    cout_pad = -(-cout // 8) * 8
    if cout_pad != cout:
        assert residual is None
        w_t = jnp.pad(w_t, ((0, cout_pad - cout), (0, 0)))

    res_flat = None
    if residual is not None:
        assert residual.shape == (cout, n, ho, wo)
        res_flat = residual.reshape(cout, m)

    y = fused_matmul_bn_act(a_t, w_t, use_bn=use_bn, act=act, residual=res_flat)
    if cout_pad != cout:
        y = y[:cout]
    return y.reshape(cout, n, ho, wo)


# ----------------------------------------------------------------------------
# CycleGenerator forward
# ----------------------------------------------------------------------------
def cycle_generator_forward(x_nchw, params):
    # NCHW -> channel-major (C, N, H, W); all intermediate activations stay in this
    # layout so the big N*H*W axis is always the 128-lane axis.
    x = jnp.transpose(x_nchw, (1, 0, 2, 3)).astype(jnp.float32)

    # conv1: Conv(3->cd, k4 s2 p1) + BN, then ReLU
    h1 = fused_layer(x, params["conv1_w"], kernel_size=4, stride=2, padding=1,
                     use_bn=True, act="relu")
    # conv2: Conv(cd->2cd, k4 s2 p1) + BN, then ReLU
    h2 = fused_layer(h1, params["conv2_w"], kernel_size=4, stride=2, padding=1,
                     use_bn=True, act="relu")
    # resnet block: ReLU(x + BN(Conv(2cd->2cd, k3 s1 p1)(x)))
    h3 = fused_layer(h2, params["res_w"], kernel_size=3, stride=1, padding=1,
                     use_bn=True, act="relu", residual=h2)
    # deconv1: ConvTranspose(2cd->cd, k4 s2 p1) + BN, then ReLU
    h4 = fused_layer(h3, params["deconv1_w"], kernel_size=4, stride=2, padding=1,
                     use_bn=True, act="relu", transposed=True)
    # deconv2: ConvTranspose(cd->3, k4 s2 p1), no BN, then tanh
    out = fused_layer(h4, params["deconv2_w"], kernel_size=4, stride=2, padding=1,
                      use_bn=False, act="tanh", transposed=True)

    return jnp.transpose(out, (1, 0, 2, 3))   # back to NCHW


def init_params(key, conv_dim):
    ks = jax.random.split(key, 5)
    cd = conv_dim
    scale = 0.05
    return {
        # PyTorch Conv2d weight layout:          (Cout, Cin, k, k)
        "conv1_w": scale * jax.random.normal(ks[0], (cd, 3, 4, 4), jnp.float32),
        "conv2_w": scale * jax.random.normal(ks[1], (2 * cd, cd, 4, 4), jnp.float32),
        "res_w": scale * jax.random.normal(ks[2], (2 * cd, 2 * cd, 3, 3), jnp.float32),
        # PyTorch ConvTranspose2d weight layout: (Cin, Cout, k, k)
        "deconv1_w": scale * jax.random.normal(ks[3], (2 * cd, cd, 4, 4), jnp.float32),
        "deconv2_w": scale * jax.random.normal(ks[4], (cd, 3, 4, 4), jnp.float32),
        # BN affine params are identity at init (weight=1, bias=0) -> omitted.
    }


if __name__ == "__main__":
    key = jax.random.PRNGKey(0)
    k_params, k_x = jax.random.split(key)

    conv_dim = 8                     # small synthetic conv_dim (module default is 64)
    params = init_params(k_params, conv_dim)
    x = jax.random.normal(k_x, (2, 3, 32, 32), jnp.float32)   # NCHW, 32x32 RGB

    fwd = jax.jit(functools.partial(cycle_generator_forward, params=params))
    out = jax.block_until_ready(fwd(x))

    assert out.shape == (2, 3, 32, 32), out.shape
    assert bool(jnp.all(jnp.isfinite(out)))
    assert bool(jnp.all(jnp.abs(out) <= 1.0))            # tanh range
    print("KERNEL_OK")
</pallas_src>

<mosaic_0001>
module attributes {stable_mosaic.version = 11 : i64} {
  func.func @kernel(%arg0: memref<8x48xbf16, #tpu.memory_space<vmem>>, %arg1: memref<48x512xbf16, #tpu.memory_space<vmem>>, %arg2: memref<8x512xf32, #tpu.memory_space<vmem>>) attributes {dimension_semantics = [], scalar_prefetch = 0 : i64, scratch_operands = 0 : i64, tpu.core_type = #tpu.core_type<tc>} {
    %c0 = arith.constant 0 : index
    %c0_0 = arith.constant 0 : index
    %0 = vector.load %arg0[%c0, %c0_0] : memref<8x48xbf16, #tpu.memory_space<vmem>>, vector<8x48xbf16>
    %c0_1 = arith.constant 0 : index
    %c0_2 = arith.constant 0 : index
    %1 = vector.load %arg1[%c0_1, %c0_2] : memref<48x512xbf16, #tpu.memory_space<vmem>>, vector<48x512xbf16>
    %cst = arith.constant dense<0.000000e+00> : vector<8x512xf32>
    %2 = tpu.matmul %0, %1, %cst {dimension_numbers = #tpu.dot_dimension_numbers<[1], [0], [0], [1], [0, 0, 1, 1], [], []>} : vector<8x48xbf16>, vector<48x512xbf16>, vector<8x512xf32> -> vector<8x512xf32>
    %cst_3 = arith.constant dense<0.000000e+00> : vector<8xf32>
    %3 = vector.multi_reduction <add>, %2, %cst_3 [1] : vector<8x512xf32> to vector<8xf32>
    %4 = vector.shape_cast %3 : vector<8xf32> to vector<8x1xf32>
    %cst_4 = arith.constant 0.001953125 : f32
    %5 = vector.broadcast %cst_4 : f32 to vector<8x1xf32>
    %6 = arith.mulf %4, %5 : vector<8x1xf32>
    %7 = vector.broadcast %6 : vector<8x1xf32> to vector<8x512xf32>
    %8 = arith.subf %2, %7 : vector<8x512xf32>
    %9 = arith.mulf %8, %8 : vector<8x512xf32>
    %cst_5 = arith.constant dense<0.000000e+00> : vector<8xf32>
    %10 = vector.multi_reduction <add>, %9, %cst_5 [1] : vector<8x512xf32> to vector<8xf32>
    %11 = vector.shape_cast %10 : vector<8xf32> to vector<8x1xf32>
    %cst_6 = arith.constant 0.001953125 : f32
    %12 = vector.broadcast %cst_6 : f32 to vector<8x1xf32>
    %13 = arith.mulf %11, %12 : vector<8x1xf32>
    %cst_7 = arith.constant 9.99999974E-6 : f32
    %14 = vector.broadcast %cst_7 : f32 to vector<8x1xf32>
    %15 = arith.addf %13, %14 : vector<8x1xf32>
    %16 = math.rsqrt %15 : vector<8x1xf32>
    %17 = vector.broadcast %16 : vector<8x1xf32> to vector<8x512xf32>
    %18 = arith.mulf %8, %17 : vector<8x512xf32>
    %cst_8 = arith.constant 0.000000e+00 : f32
    %19 = vector.broadcast %cst_8 : f32 to vector<8x512xf32>
    %20 = arith.maximumf %18, %19 : vector<8x512xf32>
    %c0_9 = arith.constant 0 : index
    %c0_10 = arith.constant 0 : index
    %21 = vector.load %arg2[%c0_9, %c0_10] : memref<8x512xf32, #tpu.memory_space<vmem>>, vector<8x512xf32>
    tpu.vector_store %arg2[%c0_9, %c0_10], %20 {strides = array<i32>} : memref<8x512xf32, #tpu.memory_space<vmem>>, vector<8x512xf32>,
    return
  }
}

module attributes {stable_mosaic.version = 11 : i64} {
  func.func @kernel(%arg0: memref<16x128xbf16, #tpu.memory_space<vmem>>, %arg1: memref<128x128xbf16, #tpu.memory_space<vmem>>, %arg2: memref<16x128xf32, #tpu.memory_space<vmem>>) attributes {dimension_semantics = [], scalar_prefetch = 0 : i64, scratch_operands = 0 : i64, tpu.core_type = #tpu.core_type<tc>} {
    %c0 = arith.constant 0 : index
    %c0_0 = arith.constant 0 : index
    %0 = vector.load %arg0[%c0, %c0_0] : memref<16x128xbf16, #tpu.memory_space<vmem>>, vector<16x128xbf16>
    %c0_1 = arith.constant 0 : index
    %c0_2 = arith.constant 0 : index
    %1 = vector.load %arg1[%c0_1, %c0_2] : memref<128x128xbf16, #tpu.memory_space<vmem>>, vector<128x128xbf16>
    %cst = arith.constant dense<0.000000e+00> : vector<16x128xf32>
    %2 = tpu.matmul %0, %1, %cst {dimension_numbers = #tpu.dot_dimension_numbers<[1], [0], [0], [1], [0, 0, 1, 1], [], []>} : vector<16x128xbf16>, vector<128x128xbf16>, vector<16x128xf32> -> vector<16x128xf32>
    %cst_3 = arith.constant dense<0.000000e+00> : vector<16xf32>
    %3 = vector.multi_reduction <add>, %2, %cst_3 [1] : vector<16x128xf32> to vector<16xf32>
    %4 = vector.shape_cast %3 : vector<16xf32> to vector<16x1xf32>
    %cst_4 = arith.constant 7.812500e-03 : f32
    %5 = vector.broadcast %cst_4 : f32 to vector<16x1xf32>
    %6 = arith.mulf %4, %5 : vector<16x1xf32>
    %7 = vector.broadcast %6 : vector<16x1xf32> to vector<16x128xf32>
    %8 = arith.subf %2, %7 : vector<16x128xf32>
    %9 = arith.mulf %8, %8 : vector<16x128xf32>
    %cst_5 = arith.constant dense<0.000000e+00> : vector<16xf32>
    %10 = vector.multi_reduction <add>, %9, %cst_5 [1] : vector<16x128xf32> to vector<16xf32>
    %11 = vector.shape_cast %10 : vector<16xf32> to vector<16x1xf32>
    %cst_6 = arith.constant 7.812500e-03 : f32
    %12 = vector.broadcast %cst_6 : f32 to vector<16x1xf32>
    %13 = arith.mulf %11, %12 : vector<16x1xf32>
    %cst_7 = arith.constant 9.99999974E-6 : f32
    %14 = vector.broadcast %cst_7 : f32 to vector<16x1xf32>
    %15 = arith.addf %13, %14 : vector<16x1xf32>
    %16 = math.rsqrt %15 : vector<16x1xf32>
    %17 = vector.broadcast %16 : vector<16x1xf32> to vector<16x128xf32>
    %18 = arith.mulf %8, %17 : vector<16x128xf32>
    %cst_8 = arith.constant 0.000000e+00 : f32
    %19 = vector.broadcast %cst_8 : f32 to vector<16x128xf32>
    %20 = arith.maximumf %18, %19 : vector<16x128xf32>
    %c0_9 = arith.constant 0 : index
    %c0_10 = arith.constant 0 : index
    %21 = vector.load %arg2[%c0_9, %c0_10] : memref<16x128xf32, #tpu.memory_space<vmem>>, vector<16x128xf32>
    tpu.vector_store %arg2[%c0_9, %c0_10], %20 {strides = array<i32>} : memref<16x128xf32, #tpu.memory_space<vmem>>, vector<16x128xf32>,
    return
  }
}

module attributes {stable_mosaic.version = 11 : i64} {
  func.func @kernel(%arg0: memref<16x144xbf16, #tpu.memory_space<vmem>>, %arg1: memref<144x128xbf16, #tpu.memory_space<vmem>>, %arg2: memref<16x128xf32, #tpu.memory_space<vmem>>, %arg3: memref<16x128xf32, #tpu.memory_space<vmem>>) attributes {dimension_semantics = [], scalar_prefetch = 0 : i64, scratch_operands = 0 : i64, tpu.core_type = #tpu.core_type<tc>} {
    %c0 = arith.constant 0 : index
    %c0_0 = arith.constant 0 : index
    %0 = vector.load %arg0[%c0, %c0_0] : memref<16x144xbf16, #tpu.memory_space<vmem>>, vector<16x144xbf16>
    %c0_1 = arith.constant 0 : index
    %c0_2 = arith.constant 0 : index
    %1 = vector.load %arg1[%c0_1, %c0_2] : memref<144x128xbf16, #tpu.memory_space<vmem>>, vector<144x128xbf16>
    %cst = arith.constant dense<0.000000e+00> : vector<16x128xf32>
    %2 = tpu.matmul %0, %1, %cst {dimension_numbers = #tpu.dot_dimension_numbers<[1], [0], [0], [1], [0, 0, 1, 1], [], []>} : vector<16x144xbf16>, vector<144x128xbf16>, vector<16x128xf32> -> vector<16x128xf32>
    %cst_3 = arith.constant dense<0.000000e+00> : vector<16xf32>
    %3 = vector.multi_reduction <add>, %2, %cst_3 [1] : vector<16x128xf32> to vector<16xf32>
    %4 = vector.shape_cast %3 : vector<16xf32> to vector<16x1xf32>
    %cst_4 = arith.constant 7.812500e-03 : f32
    %5 = vector.broadcast %cst_4 : f32 to vector<16x1xf32>
    %6 = arith.mulf %4, %5 : vector<16x1xf32>
    %7 = vector.broadcast %6 : vector<16x1xf32> to vector<16x128xf32>
    %8 = arith.subf %2, %7 : vector<16x128xf32>
    %9 = arith.mulf %8, %8 : vector<16x128xf32>
    %cst_5 = arith.constant dense<0.000000e+00> : vector<16xf32>
    %10 = vector.multi_reduction <add>, %9, %cst_5 [1] : vector<16x128xf32> to vector<16xf32>
    %11 = vector.shape_cast %10 : vector<16xf32> to vector<16x1xf32>
    %cst_6 = arith.constant 7.812500e-03 : f32
    %12 = vector.broadcast %cst_6 : f32 to vector<16x1xf32>
    %13 = arith.mulf %11, %12 : vector<16x1xf32>
    %cst_7 = arith.constant 9.99999974E-6 : f32
    %14 = vector.broadcast %cst_7 : f32 to vector<16x1xf32>
    %15 = arith.addf %13, %14 : vector<16x1xf32>
    %16 = math.rsqrt %15 : vector<16x1xf32>
    %17 = vector.broadcast %16 : vector<16x1xf32> to vector<16x128xf32>
    %18 = arith.mulf %8, %17 : vector<16x128xf32>
    %c0_8 = arith.constant 0 : index
    %c0_9 = arith.constant 0 : index
    %19 = vector.load %arg2[%c0_8, %c0_9] : memref<16x128xf32, #tpu.memory_space<vmem>>, vector<16x128xf32>
    %20 = arith.addf %18, %19 : vector<16x128xf32>
    %cst_10 = arith.constant 0.000000e+00 : f32
    %21 = vector.broadcast %cst_10 : f32 to vector<16x128xf32>
    %22 = arith.maximumf %20, %21 : vector<16x128xf32>
    %c0_11 = arith.constant 0 : index
    %c0_12 = arith.constant 0 : index
    %23 = vector.load %arg3[%c0_11, %c0_12] : memref<16x128xf32, #tpu.memory_space<vmem>>, vector<16x128xf32>
    tpu.vector_store %arg3[%c0_11, %c0_12], %22 {strides = array<i32>} : memref<16x128xf32, #tpu.memory_space<vmem>>, vector<16x128xf32>,
    return
  }
}

module attributes {stable_mosaic.version = 11 : i64} {
  func.func @kernel(%arg0: memref<8x256xbf16, #tpu.memory_space<vmem>>, %arg1: memref<256x512xbf16, #tpu.memory_space<vmem>>, %arg2: memref<8x512xf32, #tpu.memory_space<vmem>>) attributes {dimension_semantics = [], scalar_prefetch = 0 : i64, scratch_operands = 0 : i64, tpu.core_type = #tpu.core_type<tc>} {
    %c0 = arith.constant 0 : index
    %c0_0 = arith.constant 0 : index
    %0 = vector.load %arg0[%c0, %c0_0] : memref<8x256xbf16, #tpu.memory_space<vmem>>, vector<8x256xbf16>
    %c0_1 = arith.constant 0 : index
    %c0_2 = arith.constant 0 : index
    %1 = vector.load %arg1[%c0_1, %c0_2] : memref<256x512xbf16, #tpu.memory_space<vmem>>, vector<256x512xbf16>
    %cst = arith.constant dense<0.000000e+00> : vector<8x512xf32>
    %2 = tpu.matmul %0, %1, %cst {dimension_numbers = #tpu.dot_dimension_numbers<[1], [0], [0], [1], [0, 0, 1, 1], [], []>} : vector<8x256xbf16>, vector<256x512xbf16>, vector<8x512xf32> -> vector<8x512xf32>
    %cst_3 = arith.constant dense<0.000000e+00> : vector<8xf32>
    %3 = vector.multi_reduction <add>, %2, %cst_3 [1] : vector<8x512xf32> to vector<8xf32>
    %4 = vector.shape_cast %3 : vector<8xf32> to vector<8x1xf32>
    %cst_4 = arith.constant 0.001953125 : f32
    %5 = vector.broadcast %cst_4 : f32 to vector<8x1xf32>
    %6 = arith.mulf %4, %5 : vector<8x1xf32>
    %7 = vector.broadcast %6 : vector<8x1xf32> to vector<8x512xf32>
    %8 = arith.subf %2, %7 : vector<8x512xf32>
    %9 = arith.mulf %8, %8 : vector<8x512xf32>
    %cst_5 = arith.constant dense<0.000000e+00> : vector<8xf32>
    %10 = vector.multi_reduction <add>, %9, %cst_5 [1] : vector<8x512xf32> to vector<8xf32>
    %11 = vector.shape_cast %10 : vector<8xf32> to vector<8x1xf32>
    %cst_6 = arith.constant 0.001953125 : f32
    %12 = vector.broadcast %cst_6 : f32 to vector<8x1xf32>
    %13 = arith.mulf %11, %12 : vector<8x1xf32>
    %cst_7 = arith.constant 9.99999974E-6 : f32
    %14 = vector.broadcast %cst_7 : f32 to vector<8x1xf32>
    %15 = arith.addf %13, %14 : vector<8x1xf32>
    %16 = math.rsqrt %15 : vector<8x1xf32>
    %17 = vector.broadcast %16 : vector<8x1xf32> to vector<8x512xf32>
    %18 = arith.mulf %8, %17 : vector<8x512xf32>
    %cst_8 = arith.constant 0.000000e+00 : f32
    %19 = vector.broadcast %cst_8 : f32 to vector<8x512xf32>
    %20 = arith.maximumf %18, %19 : vector<8x512xf32>
    %c0_9 = arith.constant 0 : index
    %c0_10 = arith.constant 0 : index
    %21 = vector.load %arg2[%c0_9, %c0_10] : memref<8x512xf32, #tpu.memory_space<vmem>>, vector<8x512xf32>
    tpu.vector_store %arg2[%c0_9, %c0_10], %20 {strides = array<i32>} : memref<8x512xf32, #tpu.memory_space<vmem>>, vector<8x512xf32>,
    return
  }
}

module attributes {stable_mosaic.version = 11 : i64} {
  func.func @kernel(%arg0: memref<8x128xbf16, #tpu.memory_space<vmem>>, %arg1: memref<128x2048xbf16, #tpu.memory_space<vmem>>, %arg2: memref<8x2048xf32, #tpu.memory_space<vmem>>) attributes {dimension_semantics = [], scalar_prefetch = 0 : i64, scratch_operands = 0 : i64, tpu.core_type = #tpu.core_type<tc>} {
    %c0 = arith.constant 0 : index
    %c0_0 = arith.constant 0 : index
    %0 = vector.load %arg0[%c0, %c0_0] : memref<8x128xbf16, #tpu.memory_space<vmem>>, vector<8x128xbf16>
    %c0_1 = arith.constant 0 : index
    %c0_2 = arith.constant 0 : index
    %1 = vector.load %arg1[%c0_1, %c0_2] : memref<128x2048xbf16, #tpu.memory_space<vmem>>, vector<128x2048xbf16>
    %cst = arith.constant dense<0.000000e+00> : vector<8x2048xf32>
    %2 = tpu.matmul %0, %1, %cst {dimension_numbers = #tpu.dot_dimension_numbers<[1], [0], [0], [1], [0, 0, 1, 1], [], []>} : vector<8x128xbf16>, vector<128x2048xbf16>, vector<8x2048xf32> -> vector<8x2048xf32>
    %3 = math.tanh %2 : vector<8x2048xf32>
    %c0_3 = arith.constant 0 : index
    %c0_4 = arith.constant 0 : index
    %4 = vector.load %arg2[%c0_3, %c0_4] : memref<8x2048xf32, #tpu.memory_space<vmem>>, vector<8x2048xf32>
    tpu.vector_store %arg2[%c0_3, %c0_4], %3 {strides = array<i32>} : memref<8x2048xf32, #tpu.memory_space<vmem>>, vector<8x2048xf32>,
    return
  }
}

</mosaic_0001>

<bundles_post_ra>
// kernel: cycle_generator_forward.5
= control target key start
LH: loop header
LB: loop body
LE: loop exit
PB: predicated region body
PF: predicated region fallthrough
CT: control target
= control target key end

     0   :  { %vm85_vm0 = vcmask 392192   ;;  %s356_s1 = inlined_call_operand.vmem [shape: bf16[48,512], index: 1, kind: input, shape index: {}]   ;;  %s357_s0 = inlined_call_operand.vmem [shape: bf16[8,48], index: 0, kind: input, shape index: {}]   ;;  %s358_s2 = inlined_call_operand.vmem [shape: f32[8,512], index: 2, kind: output, shape index: {}]  }
   0x1   :  { %v222_v0 = vld [vmem:[%s356_s1 + $0x40] sm:$0xf]  ;;  %v250_v1 = vld [vmem:[%s356_s1 + $0x4c] sm:$0xf0]  ;;  %v248_v2 = vld [vmem:[%s356_s1 + $0x44] sm:$0xf] }
   0x2   :  { %v223_v3 = vor.u32 %v250_v1, %v222_v0  ;;  %v224_v4 = vld [vmem:[%s356_s1 + $0x50] sm:$0xf0]  ;;  %v230_v5 = vld [vmem:[%s356_s1 + $0x48] sm:$0xf]  ;;  %v251_v6 = vld [vmem:[%s356_s1 + $0x54] sm:$0xf0] }
   0x3   :  { %v227_v7 = vor.u32 %v248_v2, %v224_v4  ;;  %v231_v8 = vor.u32 %v251_v6, %v230_v5  ;;  %v249_v9 = vld [vmem:[%s356_s1 + $0x4c] sm:$0xf]  ;;  %v232_v10 = vld [vmem:[%s356_s1 + $0x58] sm:$0xf0]  ;;  %v206_v11 = vld [vmem:[%s356_s1 + $0x20] sm:$0xf] }
   0x4   :  { %94 = vmatpush.bf16.msra.mxu0 %v223_v3  ;;  %v235_v12 = vor.u32 %v249_v9, %v232_v10  ;;  %v246_v13 = vld [vmem:[%s356_s1 + $0x2c] sm:$0xf0]  ;;  %v244_v14 = vld [vmem:[%s356_s1 + $0x24] sm:$0xf]  ;;  %v208_v15 = vld [vmem:[%s356_s1 + $0x30] sm:$0xf0] }
   0x5   :  { %107 = vmatpush.bf16.msra.mxu1 %v227_v7  ;;  %120 = vmatpush.bf16.msra.mxu2 %v231_v8  ;;  %v207_v16 = vor.u32 %v246_v13, %v206_v11  ;;  %v211_v17 = vor.u32 %v244_v14, %v208_v15  ;;  %v214_v18 = vld [vmem:[%s356_s1 + $0x28] sm:$0xf]  ;;  %v247_v19 = vld [vmem:[%s356_s1 + $0x34] sm:$0xf0]  ;;  %v245_v20 = vld [vmem:[%s356_s1 + $0x2c] sm:$0xf] }
   0x6   :  { %133 = vmatpush.bf16.msra.mxu3 %v235_v12  ;;  %v215_v21 = vor.u32 %v247_v19, %v214_v18  ;;  %v216_v22 = vld [vmem:[%s356_s1 + $0x38] sm:$0xf0]  ;;  %v190_v23 = vld [vmem:[%s356_s1] sm:$0xf]  ;;  %v242_v24 = vld [vmem:[%s356_s1 + $0xc] sm:$0xf0] }
   0x7   :  { %v219_v25 = vor.u32 %v245_v20, %v216_v22  ;;  %v240_v26 = vld [vmem:[%s356_s1 + $0x4] sm:$0xf]  ;;  %v192_v27 = vld [vmem:[%s356_s1 + $0x10] sm:$0xf0]  ;;  %v198_v28 = vld [vmem:[%s356_s1 + $0x8] sm:$0xf]  ;;  %v191_v29 = vor.u32 %v242_v24, %v190_v23 }
   0x8   :  { %95 = vmatpush.bf16.msra.mxu0 %v207_v16  ;;  %v243_v30 = vld [vmem:[%s356_s1 + $0x14] sm:$0xf0]  ;;  %v241_v31 = vld [vmem:[%s356_s1 + $0xc] sm:$0xf]  ;;  %v200_v32 = vld [vmem:[%s356_s1 + $0x18] sm:$0xf0]  ;;  %v195_v33 = vor.u32 %v240_v26, %v192_v27 }
   0x9   :  { %108 = vmatpush.bf16.msra.mxu1 %v211_v17  ;;  %121 = vmatpush.bf16.msra.mxu2 %v215_v21  ;;  %v199_v34 = vor.u32 %v243_v30, %v198_v28  ;;  %v203_v35 = vor.u32 %v241_v31, %v200_v32  ;;  %v12_v36 = vld [vmem:[%s357_s0] sm:$0xf] }
   0xa   :  { %134 = vmatpush.bf16.msra.mxu3 %v219_v25 }
   0xc   :  { %96 = vmatpush.bf16.msra.mxu0 %v191_v29 }
   0xd   :  { %109 = vmatpush.bf16.msra.mxu1 %v195_v33  ;;  %122 = vmatpush.bf16.msra.mxu2 %v199_v34 }
   0xe   :  { %135 = vmatpush.bf16.msra.mxu3 %v203_v35 }
   0xf   :  { %236 = vmatmul.msk.bf16.vlgmr.msra.gmra.mxu0 %vm85_vm0, %v12_v36 }
  0x10   :  { %237 = vmatmul.msk.bf16.vlgmr.msra.gmra.mxu1 %vm85_vm0, %v12_v36  ;;  %238 = vmatmul.msk.bf16.vlgmr.msra.gmra.mxu2 %vm85_vm0, %v12_v36 }
  0x11   :  { %239 = vmatmul.msk.bf16.vlgmr.msra.gmra.mxu3 %vm85_vm0, %v12_v36 }
  0x8c   :  { %v98_v37 = vpop.f32.mrf.mxu0 }
  0x8d   :  { %v111_v38 = vpop.f32.mrf.mxu1 }
  0x8e   :  { %v141_v39 = vadd.f32 %v111_v38, %v98_v37 }
  0x93   :  { %v124_v40 = vpop.f32.mrf.mxu2 }
  0x94   :  { %v142_v41 = vadd.f32 %v141_v39, %v124_v40  ;;  %v137_v42 = vpop.f32.mrf.mxu3  ;;  %v100_v43 = vpop.f32.mrf.mxu0 }
  0x95   :  { %v113_v44 = vpop.f32.mrf.mxu1 }
  0x96   :  { %v143_v45 = vadd.f32 %v142_v41, %v137_v42 }
  0x98   :  { %144 = vadd.xlane.f32.xlu0 %v143_v45 }
  0x9b   :  { %v126_v46 = vpop.f32.mrf.mxu2 }
  0x9c   :  { %v139_v47 = vpop.f32.mrf.mxu3 }
 0x10b   :  { %v145_v48 = vpop.xlane.xlu0 %144 }
 0x10c   :  { %v146_v49 = vmul.f32 0.001953125, %v145_v48 }
 0x10e   :  { %v147_v50 = vsub.f32 %v98_v37, %v146_v49  ;;  %v148_v51 = vsub.f32 %v111_v38, %v146_v49  ;;  %v149_v52 = vsub.f32 %v124_v40, %v146_v49  ;;  %v150_v53 = vsub.f32 %v137_v42, %v146_v49 }
 0x110   :  { %v151_v54 = vmul.f32 %v147_v50, %v147_v50  ;;  %v152_v55 = vmul.f32 %v148_v51, %v148_v51  ;;  %v153_v56 = vmul.f32 %v149_v52, %v149_v52  ;;  %v154_v58 = vmul.f32 %v150_v53, %v150_v53 }
 0x112   :  { %v155_v57 = vadd.f32 %v152_v55, %v151_v54 }
 0x114   :  { %v156_v59 = vadd.f32 %v155_v57, %v153_v56 }
 0x116   :  { %v157_v60 = vadd.f32 %v156_v59, %v154_v58 }
 0x118   :  { %158 = vadd.xlane.f32.xlu0 %v157_v60 }
 0x18b   :  { %v159_v61 = vpop.xlane.xlu0 %158 }
 0x18c   :  { %v160_v62 = vmul.f32 0.001953125, %v159_v61 }
 0x18e   :  { %v161_v63 = vadd.f32 1e-05, %v160_v62 }
 0x190   :  { %252 = vrsqrt.f32 %v161_v63  ;;  %vm168_vm2 = vweird.f32 %v161_v63 }
 0x196   :  { %v253_v0 = vpop.eup %252 }
 0x197   :  { %v163_v1 = vmul.f32 %v253_v0, %v161_v63  ;;  %vm169_vm1 = vweird.f32 %v253_v0 }
 0x198   :  { %vm170_vm3 = vmor %vm168_vm2, %vm169_vm1 }
 0x199   :  { %v164_v2 = vmul.f32 %v253_v0, %v163_v1 }
 0x19b   :  { %v165_v3 = vmul.f32 0.5, %v164_v2 }
 0x19d   :  { %v166_v4 = vsub.f32 1.5, %v165_v3 }
 0x19f   :  { %v167_v5 = vmul.f32 %v253_v0, %v166_v4 }
 0x1a1   :  { %v171_v6 = vsel %vm170_vm3, %v253_v0, %v167_v5 }
 0x1a2   :  { %v172_v7 = vmul.f32 %v171_v6, %v147_v50  ;;  %v173_v8 = vmul.f32 %v171_v6, %v148_v51  ;;  %v174_v9 = vmul.f32 %v171_v6, %v149_v52  ;;  %v175_v10 = vmul.f32 %v171_v6, %v150_v53 }
 0x1a4   :  { %v176_v11 = vmax.f32 %v172_v7, 0.0  ;;  %v177_v12 = vmax.f32 %v173_v8, 0.0  ;;  %v178_v13 = vmax.f32 %v174_v9, 0.0  ;;  %v179_v14 = vmax.f32 %v175_v10, 0.0 }
 0x1a6   :  { %180 = vst [vmem:[%s358_s2] sm:$0xff] %v176_v11 }
 0x1a7   :  { %181 = vst [vmem:[%s358_s2 + $0x8] sm:$0xff] %v177_v12 }
 0x1a8   :  { %182 = vst [vmem:[%s358_s2 + $0x10] sm:$0xff] %v178_v13 }
 0x1a9   :  { %183 = vst [vmem:[%s358_s2 + $0x18] sm:$0xff] %v179_v14 }

// kernel: cycle_generator_forward.6
= control target key start
LH: loop header
LB: loop body
LE: loop exit
PB: predicated region body
PF: predicated region fallthrough
CT: control target
= control target key end

     0   :  { %s242_s1 = inlined_call_operand.vmem [shape: bf16[128,128], index: 1, kind: input, shape index: {}]   ;;  %s243_s0 = inlined_call_operand.vmem [shape: bf16[16,128], index: 0, kind: input, shape index: {}]   ;;  %s244_s2 = inlined_call_operand.vmem [shape: f32[16,128], index: 2, kind: output, shape index: {}]  }
   0x1   :  { %v189_v0 = vld [vmem:[%s242_s1 + $0x38] sm:$0xff]  ;;  %v188_v1 = vld [vmem:[%s242_s1 + $0x30] sm:$0xff]  ;;  %v187_v2 = vld [vmem:[%s242_s1 + $0x28] sm:$0xff] }
   0x2   :  { %83 = vmatpush.bf16.msra.mxu0 %v189_v0  ;;  %v186_v3 = vld [vmem:[%s242_s1 + $0x20] sm:$0xff]  ;;  %v185_v4 = vld [vmem:[%s242_s1 + $0x18] sm:$0xff]  ;;  %v184_v5 = vld [vmem:[%s242_s1 + $0x10] sm:$0xff] }
   0x3   :  { %v183_v6 = vld [vmem:[%s242_s1 + $0x8] sm:$0xff]  ;;  %v182_v7 = vld [vmem:[%s242_s1] sm:$0xff] }
   0x4   :  { %v181_v8 = vld [vmem:[%s243_s0] sm:$0xff] }
   0x6   :  { %84 = vmatpush.bf16.msra.mxu0 %v188_v1 }
   0xa   :  { %85 = vmatpush.bf16.msra.mxu0 %v187_v2 }
   0xe   :  { %86 = vmatpush.bf16.msra.mxu0 %v186_v3 }
  0x12   :  { %87 = vmatpush.bf16.msra.mxu0 %v185_v4 }
  0x16   :  { %88 = vmatpush.bf16.msra.mxu0 %v184_v5 }
  0x1a   :  { %89 = vmatpush.bf16.msra.mxu0 %v183_v6 }
  0x1e   :  { %90 = vmatpush.bf16.msra.mxu0 %v182_v7 }
  0x21   :  { %91 = vmatmul.bf16.vlgmr.msra.gmra.mxu0 %v181_v8 }
  0x9e   :  { %v92_v9 = vpop.f32.mrf.mxu0 }
  0x9f   :  { %97 = vadd.xlane.f32.xlu0 %v92_v9 }
  0xa6   :  { %v94_v10 = vpop.f32.mrf.mxu0 }
  0xa7   :  { %99 = vadd.xlane.f32.xlu0 %v94_v10 }
 0x112   :  { %v98_v11 = vpop.xlane.xlu0 %97 }
 0x113   :  { %v101_v12 = vmul.f32 0.0078125, %v98_v11 }
 0x115   :  { %v103_v13 = vsub.f32 %v92_v9, %v101_v12 }
 0x117   :  { %v105_v14 = vmul.f32 %v103_v13, %v103_v13 }
 0x119   :  { %107 = vadd.xlane.f32.xlu1 %v105_v14 }
 0x11a   :  { %v100_v15 = vpop.xlane.xlu0 %99 }
 0x11b   :  { %v102_v16 = vmul.f32 0.0078125, %v100_v15 }
 0x11d   :  { %v104_v17 = vsub.f32 %v94_v10, %v102_v16 }
 0x11f   :  { %v106_v18 = vmul.f32 %v104_v17, %v104_v17 }
 0x121   :  { %109 = vadd.xlane.f32.xlu1 %v106_v18 }
 0x18c   :  { %v108_v19 = vpop.xlane.xlu1 %107 }
 0x18d   :  { %v111_v20 = vmul.f32 0.0078125, %v108_v19 }
 0x18f   :  { %v113_v21 = vadd.f32 1e-05, %v111_v20 }
 0x191   :  { %190 = vrsqrt.f32 %v113_v21  ;;  %vm121_vm1 = vweird.f32 %v113_v21 }
 0x194   :  { %v110_v22 = vpop.xlane.xlu1 %109 }
 0x195   :  { %v112_v23 = vmul.f32 0.0078125, %v110_v22 }
 0x197   :  { %v191_v24 = vpop.eup %190  ;;  %v114_v25 = vadd.f32 1e-05, %v112_v23 }
 0x198   :  { %v116_v26 = vmul.f32 %v191_v24, %v113_v21  ;;  %vm122_vm0 = vweird.f32 %v191_v24 }
 0x199   :  { %192 = vrsqrt.f32 %v114_v25  ;;  %vm123_vm2 = vmor %vm121_vm1, %vm122_vm0  ;;  %vm131_vm4 = vweird.f32 %v114_v25 }
 0x19a   :  { %v117_v27 = vmul.f32 %v191_v24, %v116_v26 }
 0x19c   :  { %v118_v28 = vmul.f32 0.5, %v117_v27 }
 0x19e   :  { %v119_v29 = vsub.f32 1.5, %v118_v28 }
 0x19f   :  { %v193_v30 = vpop.eup %192 }
 0x1a0   :  { %v120_v31 = vmul.f32 %v191_v24, %v119_v29  ;;  %v126_v32 = vmul.f32 %v193_v30, %v114_v25  ;;  %vm132_vm3 = vweird.f32 %v193_v30 }
 0x1a1   :  { %vm133_vm5 = vmor %vm131_vm4, %vm132_vm3 }
 0x1a2   :  { %v124_v33 = vsel %vm123_vm2, %v191_v24, %v120_v31  ;;  %v127_v34 = vmul.f32 %v193_v30, %v126_v32 }
 0x1a3   :  { %v135_v35 = vmul.f32 %v124_v33, %v103_v13 }
 0x1a4   :  { %v128_v36 = vmul.f32 0.5, %v127_v34 }
 0x1a5   :  { %v137_v37 = vmax.f32 %v135_v35, 0.0 }
 0x1a6   :  { %v129_v38 = vsub.f32 1.5, %v128_v36 }
 0x1a7   :  { %139 = vst [vmem:[%s244_s2] sm:$0xff] %v137_v37 }
 0x1a8   :  { %v130_v39 = vmul.f32 %v193_v30, %v129_v38 }
 0x1aa   :  { %v134_v40 = vsel %vm133_vm5, %v193_v30, %v130_v39 }
 0x1ab   :  { %v136_v41 = vmul.f32 %v134_v40, %v104_v17 }
 0x1ad   :  { %v138_v42 = vmax.f32 %v136_v41, 0.0 }
 0x1af   :  { %140 = vst [vmem:[%s244_s2 + $0x8] sm:$0xff] %v138_v42 }

// kernel: cycle_generator_forward.7
= control target key start
LH: loop header
LB: loop body
LE: loop exit
PB: predicated region body
PF: predicated region fallthrough
CT: control target
= control target key end

     0   :  { %vm98_vm0 = vcmask 130048   ;;  %s313_s1 = inlined_call_operand.vmem [shape: bf16[144,128], index: 1, kind: input, shape index: {}]   ;;  %s314_s0 = inlined_call_operand.vmem [shape: bf16[16,144], index: 0, kind: input, shape index: {}]   ;;  %s315_s2 = inlined_call_operand.vmem [shape: f32[16,128], index: 2, kind: input, shape index: {}]   ;;  %s316_s3 = inlined_call_operand.vmem [shape: f32[16,128], index: 3, kind: output, shape index: {}]  }
   0x1   :  { %v236_v0 = vld [vmem:[%s313_s1 + $0x38] sm:$0xff]  ;;  %v235_v1 = vld [vmem:[%s313_s1 + $0x30] sm:$0xff]  ;;  %v237_v2 = vld [vmem:[%s313_s1 + $0x40] sm:$0xff] }
   0x2   :  { %102 = vmatpush.bf16.msra.mxu0 %v236_v0  ;;  %v227_v3 = vld [vmem:[%s314_s0 + $0x4] sm:$0xf]  ;;  %v186_v4 = vld [vmem:[%s314_s0 + $0x8] sm:$0xf0]  ;;  %123 = vmatpush.bf16.msra.mxu1 %v237_v2  ;;  %v232_v8 = vld [vmem:[%s313_s1 + $0x18] sm:$0xff] }
   0x3   :  { %v189_v5 = vor.u32 %v227_v3, %v186_v4  ;;  %v234_v6 = vld [vmem:[%s313_s1 + $0x28] sm:$0xff]  ;;  %v233_v7 = vld [vmem:[%s313_s1 + $0x20] sm:$0xff]  ;;  %v231_v9 = vld [vmem:[%s313_s1 + $0x10] sm:$0xff] }
   0x4   :  { %v230_v10 = vld [vmem:[%s313_s1 + $0x8] sm:$0xff]  ;;  %v229_v11 = vld [vmem:[%s313_s1] sm:$0xff] }
   0x5   :  { %226 = vmatmul.msk.bf16.vlgmr.msra.gmra.mxu1 %vm98_vm0, %v189_v5  ;;  %v184_v12 = vld [vmem:[%s314_s0] sm:$0xf]  ;;  %v228_v13 = vld [vmem:[%s314_s0 + $0x4] sm:$0xf0] }
   0x6   :  { %103 = vmatpush.bf16.msra.mxu0 %v235_v1  ;;  %v185_v14 = vor.u32 %v228_v13, %v184_v12  ;;  %v170_v43 = vld [vmem:[%s315_s2] sm:$0xff]  ;;  %v171_v52 = vld [vmem:[%s315_s2 + $0x8] sm:$0xff] }
   0xa   :  { %104 = vmatpush.bf16.msra.mxu0 %v234_v6 }
   0xe   :  { %105 = vmatpush.bf16.msra.mxu0 %v233_v7 }
  0x12   :  { %106 = vmatpush.bf16.msra.mxu0 %v232_v8 }
  0x16   :  { %107 = vmatpush.bf16.msra.mxu0 %v231_v9 }
  0x1a   :  { %108 = vmatpush.bf16.msra.mxu0 %v230_v10 }
  0x1e   :  { %109 = vmatpush.bf16.msra.mxu0 %v229_v11 }
  0x21   :  { %110 = vmatmul.bf16.vlgmr.msra.gmra.mxu0 %v185_v14 }
  0x82   :  { %v125_v15 = vpop.f32.mrf.mxu1 }
  0x8a   :  { %v127_v18 = vpop.f32.mrf.mxu1 }
  0x9e   :  { %v111_v16 = vpop.f32.mrf.mxu0 }
  0x9f   :  { %v126_v17 = vadd.f32 %v125_v15, %v111_v16 }
  0xa1   :  { %130 = vadd.xlane.f32.xlu0 %v126_v17 }
  0xa6   :  { %v113_v19 = vpop.f32.mrf.mxu0 }
  0xa7   :  { %v128_v20 = vadd.f32 %v127_v18, %v113_v19 }
  0xa9   :  { %132 = vadd.xlane.f32.xlu0 %v128_v20 }
 0x114   :  { %v131_v21 = vpop.xlane.xlu0 %130 }
 0x115   :  { %v134_v22 = vmul.f32 0.0078125, %v131_v21 }
 0x117   :  { %v136_v23 = vsub.f32 %v126_v17, %v134_v22 }
 0x119   :  { %v138_v24 = vmul.f32 %v136_v23, %v136_v23 }
 0x11b   :  { %140 = vadd.xlane.f32.xlu1 %v138_v24 }
 0x11c   :  { %v133_v25 = vpop.xlane.xlu0 %132 }
 0x11d   :  { %v135_v26 = vmul.f32 0.0078125, %v133_v25 }
 0x11f   :  { %v137_v27 = vsub.f32 %v128_v20, %v135_v26 }
 0x121   :  { %v139_v28 = vmul.f32 %v137_v27, %v137_v27 }
 0x123   :  { %142 = vadd.xlane.f32.xlu1 %v139_v28 }
 0x18e   :  { %v141_v29 = vpop.xlane.xlu1 %140 }
 0x18f   :  { %v144_v30 = vmul.f32 0.0078125, %v141_v29 }
 0x191   :  { %v146_v31 = vadd.f32 1e-05, %v144_v30 }
 0x193   :  { %238 = vrsqrt.f32 %v146_v31  ;;  %vm154_vm2 = vweird.f32 %v146_v31 }
 0x196   :  { %v143_v32 = vpop.xlane.xlu1 %142 }
 0x197   :  { %v145_v33 = vmul.f32 0.0078125, %v143_v32 }
 0x199   :  { %v239_v34 = vpop.eup %238  ;;  %v147_v35 = vadd.f32 1e-05, %v145_v33 }
 0x19a   :  { %v149_v36 = vmul.f32 %v239_v34, %v146_v31  ;;  %vm155_vm1 = vweird.f32 %v239_v34 }
 0x19b   :  { %240 = vrsqrt.f32 %v147_v35  ;;  %vm156_vm3 = vmor %vm154_vm2, %vm155_vm1  ;;  %vm164_vm5 = vweird.f32 %v147_v35 }
 0x19c   :  { %v150_v37 = vmul.f32 %v239_v34, %v149_v36 }
 0x19e   :  { %v151_v38 = vmul.f32 0.5, %v150_v37 }
 0x1a0   :  { %v152_v39 = vsub.f32 1.5, %v151_v38 }
 0x1a1   :  { %v241_v40 = vpop.eup %240 }
 0x1a2   :  { %v153_v41 = vmul.f32 %v239_v34, %v152_v39  ;;  %v159_v42 = vmul.f32 %v241_v40, %v147_v35  ;;  %vm165_vm4 = vweird.f32 %v241_v40 }
 0x1a3   :  { %vm166_vm6 = vmor %vm164_vm5, %vm165_vm4 }
 0x1a4   :  { %v157_v44 = vsel %vm156_vm3, %v239_v34, %v153_v41  ;;  %v160_v45 = vmul.f32 %v241_v40, %v159_v42 }
 0x1a5   :  { %v168_v46 = vmul.f32 %v157_v44, %v136_v23 }
 0x1a6   :  { %v161_v47 = vmul.f32 0.5, %v160_v45 }
 0x1a7   :  { %v172_v48 = vadd.f32 %v170_v43, %v168_v46 }
 0x1a8   :  { %v162_v49 = vsub.f32 1.5, %v161_v47 }
 0x1a9   :  { %v174_v50 = vmax.f32 %v172_v48, 0.0 }
 0x1aa   :  { %v163_v51 = vmul.f32 %v241_v40, %v162_v49 }
 0x1ab   :  { %176 = vst [vmem:[%s316_s3] sm:$0xff] %v174_v50 }
 0x1ac   :  { %v167_v53 = vsel %vm166_vm6, %v241_v40, %v163_v51 }
 0x1ad   :  { %v169_v54 = vmul.f32 %v167_v53, %v137_v27 }
 0x1af   :  { %v173_v55 = vadd.f32 %v171_v52, %v169_v54 }
 0x1b1   :  { %v175_v56 = vmax.f32 %v173_v55, 0.0 }
 0x1b3   :  { %177 = vst [vmem:[%s316_s3 + $0x8] sm:$0xff] %v175_v56 }

// kernel: cycle_generator_forward.8
= control target key start
LH: loop header
LB: loop body
LE: loop exit
PB: predicated region body
PF: predicated region fallthrough
CT: control target
= control target key end

     0   :  { %s1302_s1 = inlined_call_operand.vmem [shape: bf16[256,512], index: 1, kind: input, shape index: {}]   ;;  %s1303_s0 = inlined_call_operand.vmem [shape: bf16[8,256], index: 0, kind: input, shape index: {}]   ;;  %s1304_s2 = inlined_call_operand.vmem [shape: f32[8,512], index: 2, kind: output, shape index: {}]  }
   0x1   :  { %v668_v0 = vld [vmem:[%s1302_s1 + $0xe0] sm:$0xf]  ;;  %v840_v1 = vld [vmem:[%s1302_s1 + $0xec] sm:$0xf0]  ;;  %v838_v5 = vld [vmem:[%s1302_s1 + $0xe4] sm:$0xf] }
   0x2   :  { %v796_v2 = vld [vmem:[%s1302_s1 + $0x1e0] sm:$0xf]  ;;  %v669_v3 = vor.u32 %v840_v1, %v668_v0  ;;  %v872_v4 = vld [vmem:[%s1302_s1 + $0x1ec] sm:$0xf0]  ;;  %v670_v6 = vld [vmem:[%s1302_s1 + $0xf0] sm:$0xf0] }
   0x3   :  { %v797_v7 = vor.u32 %v872_v4, %v796_v2  ;;  %v673_v8 = vor.u32 %v838_v5, %v670_v6  ;;  %v870_v9 = vld [vmem:[%s1302_s1 + $0x1e4] sm:$0xf]  ;;  %v798_v10 = vld [vmem:[%s1302_s1 + $0x1f0] sm:$0xf0]  ;;  %v652_v11 = vld [vmem:[%s1302_s1 + $0xc0] sm:$0xf] }
   0x4   :  { %403 = vmatpush.bf16.msra.mxu0 %v669_v3  ;;  %v801_v12 = vor.u32 %v870_v9, %v798_v10  ;;  %v836_v13 = vld [vmem:[%s1302_s1 + $0xcc] sm:$0xf0]  ;;  %v780_v14 = vld [vmem:[%s1302_s1 + $0x1c0] sm:$0xf]  ;;  %v834_v18 = vld [vmem:[%s1302_s1 + $0xc4] sm:$0xf] }
   0x5   :  { %v868_v15 = vld [vmem:[%s1302_s1 + $0x1cc] sm:$0xf0]  ;;  %416 = vmatpush.bf16.msra.mxu1 %v797_v7  ;;  %429 = vmatpush.bf16.msra.mxu2 %v673_v8  ;;  %v653_v16 = vor.u32 %v836_v13, %v652_v11  ;;  %v654_v19 = vld [vmem:[%s1302_s1 + $0xd0] sm:$0xf0]  ;;  %v866_v20 = vld [vmem:[%s1302_s1 + $0x1c4] sm:$0xf] }
   0x6   :  { %v781_v17 = vor.u32 %v868_v15, %v780_v14  ;;  %442 = vmatpush.bf16.msra.mxu3 %v801_v12  ;;  %v657_v21 = vor.u32 %v834_v18, %v654_v19  ;;  %v782_v22 = vld [vmem:[%s1302_s1 + $0x1d0] sm:$0xf0]  ;;  %v636_v23 = vld [vmem:[%s1302_s1 + $0xa0] sm:$0xf]  ;;  %v832_v24 = vld [vmem:[%s1302_s1 + $0xac] sm:$0xf0] }
   0x7   :  { %v785_v25 = vor.u32 %v866_v20, %v782_v22  ;;  %v764_v26 = vld [vmem:[%s1302_s1 + $0x1a0] sm:$0xf]  ;;  %v864_v27 = vld [vmem:[%s1302_s1 + $0x1ac] sm:$0xf0]  ;;  %v830_v28 = vld [vmem:[%s1302_s1 + $0xa4] sm:$0xf]  ;;  %v637_v29 = vor.u32 %v832_v24, %v636_v23 }
   0x8   :  { %404 = vmatpush.bf16.msra.mxu0 %v653_v16  ;;  %v638_v30 = vld [vmem:[%s1302_s1 + $0xb0] sm:$0xf0]  ;;  %v862_v31 = vld [vmem:[%s1302_s1 + $0x1a4] sm:$0xf]  ;;  %v765_v33 = vor.u32 %v864_v27, %v764_v26  ;;  %v620_v35 = vld [vmem:[%s1302_s1 + $0x80] sm:$0xf] }
   0x9   :  { %v766_v32 = vld [vmem:[%s1302_s1 + $0x1b0] sm:$0xf0]  ;;  %417 = vmatpush.bf16.msra.mxu1 %v781_v17  ;;  %430 = vmatpush.bf16.msra.mxu2 %v657_v21  ;;  %v641_v34 = vor.u32 %v830_v28, %v638_v30  ;;  %v828_v36 = vld [vmem:[%s1302_s1 + $0x8c] sm:$0xf0]  ;;  %v748_v37 = vld [vmem:[%s1302_s1 + $0x180] sm:$0xf] }
   0xa   :  { %443 = vmatpush.bf16.msra.mxu3 %v785_v25  ;;  %v769_v38 = vor.u32 %v862_v31, %v766_v32  ;;  %v860_v39 = vld [vmem:[%s1302_s1 + $0x18c] sm:$0xf0]  ;;  %v826_v40 = vld [vmem:[%s1302_s1 + $0x84] sm:$0xf]  ;;  %v622_v41 = vld [vmem:[%s1302_s1 + $0x90] sm:$0xf0]  ;;  %v621_v44 = vor.u32 %v828_v36, %v620_v35 }
   0xb   :  { %v858_v42 = vld [vmem:[%s1302_s1 + $0x184] sm:$0xf]  ;;  %v750_v43 = vld [vmem:[%s1302_s1 + $0x190] sm:$0xf0]  ;;  %v749_v45 = vor.u32 %v860_v39, %v748_v37  ;;  %v625_v46 = vor.u32 %v826_v40, %v622_v41  ;;  %v604_v47 = vld [vmem:[%s1302_s1 + $0x60] sm:$0xf] }
   0xc   :  { %405 = vmatpush.bf16.msra.mxu0 %v637_v29  ;;  %v824_v48 = vld [vmem:[%s1302_s1 + $0x6c] sm:$0xf0]  ;;  %v732_v49 = vld [vmem:[%s1302_s1 + $0x160] sm:$0xf]  ;;  %v753_v50 = vor.u32 %v858_v42, %v750_v43  ;;  %v822_v52 = vld [vmem:[%s1302_s1 + $0x64] sm:$0xf] }
   0xd   :  { %418 = vmatpush.bf16.msra.mxu1 %v765_v33  ;;  %431 = vmatpush.bf16.msra.mxu2 %v641_v34  ;;  %v856_v51 = vld [vmem:[%s1302_s1 + $0x16c] sm:$0xf0]  ;;  %v606_v53 = vld [vmem:[%s1302_s1 + $0x70] sm:$0xf0]  ;;  %v854_v54 = vld [vmem:[%s1302_s1 + $0x164] sm:$0xf]  ;;  %v605_v56 = vor.u32 %v824_v48, %v604_v47 }
   0xe   :  { %444 = vmatpush.bf16.msra.mxu3 %v769_v38  ;;  %v734_v55 = vld [vmem:[%s1302_s1 + $0x170] sm:$0xf0]  ;;  %v733_v57 = vor.u32 %v856_v51, %v732_v49  ;;  %v609_v58 = vor.u32 %v822_v52, %v606_v53  ;;  %v588_v59 = vld [vmem:[%s1302_s1 + $0x40] sm:$0xf]  ;;  %v820_v60 = vld [vmem:[%s1302_s1 + $0x4c] sm:$0xf0] }
   0xf   :  { %v716_v61 = vld [vmem:[%s1302_s1 + $0x140] sm:$0xf]  ;;  %v737_v62 = vor.u32 %v854_v54, %v734_v55  ;;  %v852_v63 = vld [vmem:[%s1302_s1 + $0x14c] sm:$0xf0]  ;;  %v818_v0 = vld [vmem:[%s1302_s1 + $0x44] sm:$0xf]  ;;  %v589_v4 = vor.u32 %v820_v60, %v588_v59 }
  0x10   :  { %406 = vmatpush.bf16.msra.mxu0 %v621_v44  ;;  %v590_v1 = vld [vmem:[%s1302_s1 + $0x50] sm:$0xf0]  ;;  %v850_v2 = vld [vmem:[%s1302_s1 + $0x144] sm:$0xf]  ;;  %v717_v5 = vor.u32 %v852_v63, %v716_v61  ;;  %v572_v7 = vld [vmem:[%s1302_s1 + $0x20] sm:$0xf] }
  0x11   :  { %419 = vmatpush.bf16.msra.mxu1 %v749_v45  ;;  %432 = vmatpush.bf16.msra.mxu2 %v625_v46  ;;  %v718_v3 = vld [vmem:[%s1302_s1 + $0x150] sm:$0xf0]  ;;  %v593_v6 = vor.u32 %v818_v0, %v590_v1  ;;  %v816_v8 = vld [vmem:[%s1302_s1 + $0x2c] sm:$0xf0]  ;;  %v700_v9 = vld [vmem:[%s1302_s1 + $0x120] sm:$0xf] }
  0x12   :  { %445 = vmatpush.bf16.msra.mxu3 %v753_v50  ;;  %v721_v10 = vor.u32 %v850_v2, %v718_v3  ;;  %v848_v11 = vld [vmem:[%s1302_s1 + $0x12c] sm:$0xf0]  ;;  %v814_v12 = vld [vmem:[%s1302_s1 + $0x24] sm:$0xf]  ;;  %v574_v13 = vld [vmem:[%s1302_s1 + $0x30] sm:$0xf0]  ;;  %v573_v16 = vor.u32 %v816_v8, %v572_v7 }
  0x13   :  { %v846_v14 = vld [vmem:[%s1302_s1 + $0x124] sm:$0xf]  ;;  %v702_v15 = vld [vmem:[%s1302_s1 + $0x130] sm:$0xf0]  ;;  %v556_v17 = vld [vmem:[%s1302_s1] sm:$0xf]  ;;  %v701_v20 = vor.u32 %v848_v11, %v700_v9  ;;  %v577_v21 = vor.u32 %v814_v12, %v574_v13 }
  0x14   :  { %407 = vmatpush.bf16.msra.mxu0 %v605_v56  ;;  %v812_v18 = vld [vmem:[%s1302_s1 + $0xc] sm:$0xf0]  ;;  %v684_v19 = vld [vmem:[%s1302_s1 + $0x100] sm:$0xf]  ;;  %v810_v23 = vld [vmem:[%s1302_s1 + $0x4] sm:$0xf]  ;;  %v705_v25 = vor.u32 %v846_v14, %v702_v15 }
  0x15   :  { %420 = vmatpush.bf16.msra.mxu1 %v733_v57  ;;  %433 = vmatpush.bf16.msra.mxu2 %v609_v58  ;;  %v844_v22 = vld [vmem:[%s1302_s1 + $0x10c] sm:$0xf0]  ;;  %v558_v24 = vld [vmem:[%s1302_s1 + $0x10] sm:$0xf0]  ;;  %v842_v26 = vld [vmem:[%s1302_s1 + $0x104] sm:$0xf]  ;;  %v557_v32 = vor.u32 %v812_v18, %v556_v17 }
  0x16   :  { %446 = vmatpush.bf16.msra.mxu3 %v737_v62  ;;  %v686_v27 = vld [vmem:[%s1302_s1 + $0x110] sm:$0xf0]  ;;  %v676_v28 = vld [vmem:[%s1302_s1 + $0xe8] sm:$0xf]  ;;  %v841_v29 = vld [vmem:[%s1302_s1 + $0xf4] sm:$0xf0]  ;;  %v685_v37 = vor.u32 %v844_v22, %v684_v19  ;;  %v561_v38 = vor.u32 %v810_v23, %v558_v24 }
  0x17   :  { %v804_v30 = vld [vmem:[%s1302_s1 + $0x1e8] sm:$0xf]  ;;  %v11_v31 = vld [vmem:[%s1303_s0] sm:$0xff]  ;;  %v873_v33 = vld [vmem:[%s1302_s1 + $0x1f4] sm:$0xf0]  ;;  %v689_v42 = vor.u32 %v842_v26, %v686_v27  ;;  %v677_v43 = vor.u32 %v841_v29, %v676_v28 }
  0x18   :  { %408 = vmatpush.bf16.msra.mxu0 %v589_v4  ;;  %v839_v34 = vld [vmem:[%s1302_s1 + $0xec] sm:$0xf]  ;;  %v678_v35 = vld [vmem:[%s1302_s1 + $0xf8] sm:$0xf0]  ;;  %v77_v36 = vunpack.c.l.b16 %v11_v31  ;;  %v78_v41 = vunpack.c.h.b16 %v11_v31  ;;  %v805_v44 = vor.u32 %v873_v33, %v804_v30  ;;  %v660_v46 = vld [vmem:[%s1302_s1 + $0xc8] sm:$0xf] }
  0x19   :  { %421 = vmatpush.bf16.msra.mxu1 %v717_v5  ;;  %434 = vmatpush.bf16.msra.mxu2 %v593_v6  ;;  %v871_v39 = vld [vmem:[%s1302_s1 + $0x1ec] sm:$0xf]  ;;  %v806_v40 = vld [vmem:[%s1302_s1 + $0x1f8] sm:$0xf0]  ;;  %v681_v45 = vor.u32 %v839_v34, %v678_v35  ;;  %v837_v47 = vld [vmem:[%s1302_s1 + $0xd4] sm:$0xf0] }
  0x1a   :  { %447 = vmatpush.bf16.msra.mxu3 %v721_v10  ;;  %v788_v48 = vld [vmem:[%s1302_s1 + $0x1c8] sm:$0xf]  ;;  %v809_v49 = vor.u32 %v871_v39, %v806_v40  ;;  %v869_v50 = vld [vmem:[%s1302_s1 + $0x1d4] sm:$0xf0]  ;;  %v835_v51 = vld [vmem:[%s1302_s1 + $0xcc] sm:$0xf]  ;;  %v1128_v53 = vpack.c.b16 %v77_v36, %v77_v36  ;;  %v1136_v56 = vpack.c.b16 %v78_v41, %v78_v41  ;;  %v661_v57 = vor.u32 %v837_v47, %v660_v46 }
  0x1b   :  { %v662_v52 = vld [vmem:[%s1302_s1 + $0xd8] sm:$0xf0]  ;;  %v867_v54 = vld [vmem:[%s1302_s1 + $0x1cc] sm:$0xf]  ;;  %v789_v58 = vor.u32 %v869_v50, %v788_v48  ;;  %v644_v60 = vld [vmem:[%s1302_s1 + $0xa8] sm:$0xf] }
  0x1c   :  { %409 = vmatpush.bf16.msra.mxu0 %v573_v16  ;;  %v790_v55 = vld [vmem:[%s1302_s1 + $0x1d8] sm:$0xf0]  ;;  %v665_v59 = vor.u32 %v835_v51, %v662_v52  ;;  %v833_v61 = vld [vmem:[%s1302_s1 + $0xb4] sm:$0xf0]  ;;  %v772_v62 = vld [vmem:[%s1302_s1 + $0x1a8] sm:$0xf] }
  0x1d   :  { %422 = vmatpush.bf16.msra.mxu1 %v701_v20  ;;  %435 = vmatpush.bf16.msra.mxu2 %v577_v21  ;;  %v793_v63 = vor.u32 %v867_v54, %v790_v55  ;;  %v865_v0 = vld [vmem:[%s1302_s1 + $0x1b4] sm:$0xf0]  ;;  %v831_v1 = vld [vmem:[%s1302_s1 + $0xac] sm:$0xf]  ;;  %v646_v2 = vld [vmem:[%s1302_s1 + $0xb8] sm:$0xf0]  ;;  %v645_v5 = vor.u32 %v833_v61, %v644_v60 }
  0x1e   :  { %448 = vmatpush.bf16.msra.mxu3 %v705_v25  ;;  %v863_v3 = vld [vmem:[%s1302_s1 + $0x1ac] sm:$0xf]  ;;  %v774_v4 = vld [vmem:[%s1302_s1 + $0x1b8] sm:$0xf0]  ;;  %v773_v6 = vor.u32 %v865_v0, %v772_v62  ;;  %v649_v7 = vor.u32 %v831_v1, %v646_v2  ;;  %v628_v8 = vld [vmem:[%s1302_s1 + $0x88] sm:$0xf] }
  0x1f   :  { %v829_v9 = vld [vmem:[%s1302_s1 + $0x94] sm:$0xf0]  ;;  %v756_v10 = vld [vmem:[%s1302_s1 + $0x188] sm:$0xf]  ;;  %v777_v11 = vor.u32 %v863_v3, %v774_v4  ;;  %v827_v13 = vld [vmem:[%s1302_s1 + $0x8c] sm:$0xf] }
  0x20   :  { %410 = vmatpush.bf16.msra.mxu0 %v557_v32  ;;  %v861_v12 = vld [vmem:[%s1302_s1 + $0x194] sm:$0xf0]  ;;  %v630_v14 = vld [vmem:[%s1302_s1 + $0x98] sm:$0xf0]  ;;  %v859_v15 = vld [vmem:[%s1302_s1 + $0x18c] sm:$0xf]  ;;  %v629_v17 = vor.u32 %v829_v9, %v628_v8 }
  0x21   :  { %423 = vmatpush.bf16.msra.mxu1 %v685_v37  ;;  %436 = vmatpush.bf16.msra.mxu2 %v561_v38  ;;  %v758_v16 = vld [vmem:[%s1302_s1 + $0x198] sm:$0xf0]  ;;  %v757_v18 = vor.u32 %v861_v12, %v756_v10  ;;  %v633_v19 = vor.u32 %v827_v13, %v630_v14  ;;  %v612_v20 = vld [vmem:[%s1302_s1 + $0x68] sm:$0xf]  ;;  %v825_v21 = vld [vmem:[%s1302_s1 + $0x74] sm:$0xf0] }
  0x22   :  { %449 = vmatpush.bf16.msra.mxu3 %v689_v42  ;;  %v740_v22 = vld [vmem:[%s1302_s1 + $0x168] sm:$0xf]  ;;  %v761_v23 = vor.u32 %v859_v15, %v758_v16  ;;  %v857_v24 = vld [vmem:[%s1302_s1 + $0x174] sm:$0xf0]  ;;  %v823_v25 = vld [vmem:[%s1302_s1 + $0x6c] sm:$0xf]  ;;  %v613_v29 = vor.u32 %v825_v21, %v612_v20 }
  0x23   :  { %411 = vmatmul.bf16.vlgmr.msra.gmra.mxu0 %v1128_v53  ;;  %v614_v26 = vld [vmem:[%s1302_s1 + $0x78] sm:$0xf0]  ;;  %v855_v27 = vld [vmem:[%s1302_s1 + $0x16c] sm:$0xf]  ;;  %v741_v30 = vor.u32 %v857_v24, %v740_v22  ;;  %v596_v32 = vld [vmem:[%s1302_s1 + $0x48] sm:$0xf] }
  0x24   :  { %455 = vmatpush.bf16.msrb.mxu0 %v677_v43  ;;  %437 = vmatmul.bf16.vlgmr.msra.gmra.mxu2 %v1128_v53  ;;  %v742_v28 = vld [vmem:[%s1302_s1 + $0x178] sm:$0xf0]  ;;  %v617_v31 = vor.u32 %v823_v25, %v614_v26  ;;  %v821_v33 = vld [vmem:[%s1302_s1 + $0x54] sm:$0xf0]  ;;  %v724_v34 = vld [vmem:[%s1302_s1 + $0x148] sm:$0xf] }
  0x25   :  { %468 = vmatpush.bf16.msrb.mxu1 %v805_v44  ;;  %481 = vmatpush.bf16.msrb.mxu2 %v681_v45  ;;  %v745_v35 = vor.u32 %v855_v27, %v742_v28  ;;  %v853_v36 = vld [vmem:[%s1302_s1 + $0x154] sm:$0xf0]  ;;  %v819_v37 = vld [vmem:[%s1302_s1 + $0x4c] sm:$0xf]  ;;  %v598_v38 = vld [vmem:[%s1302_s1 + $0x58] sm:$0xf0]  ;;  %v597_v41 = vor.u32 %v821_v33, %v596_v32 }
  0x26   :  { %494 = vmatpush.bf16.msrb.mxu3 %v809_v49  ;;  %424 = vmatmul.bf16.vlgmr.msra.gmra.mxu1 %v1136_v56  ;;  %v851_v39 = vld [vmem:[%s1302_s1 + $0x14c] sm:$0xf]  ;;  %v726_v40 = vld [vmem:[%s1302_s1 + $0x158] sm:$0xf0]  ;;  %v725_v42 = vor.u32 %v853_v36, %v724_v34  ;;  %v601_v43 = vor.u32 %v819_v37, %v598_v38  ;;  %v580_v44 = vld [vmem:[%s1302_s1 + $0x28] sm:$0xf] }
  0x27   :  { %450 = vmatmul.bf16.vlgmr.msra.gmra.mxu3 %v1136_v56  ;;  %v817_v45 = vld [vmem:[%s1302_s1 + $0x34] sm:$0xf0]  ;;  %v708_v46 = vld [vmem:[%s1302_s1 + $0x128] sm:$0xf]  ;;  %v729_v47 = vor.u32 %v851_v39, %v726_v40  ;;  %v815_v49 = vld [vmem:[%s1302_s1 + $0x2c] sm:$0xf] }
  0x28   :  { %456 = vmatpush.bf16.msrb.mxu0 %v661_v57  ;;  %v849_v48 = vld [vmem:[%s1302_s1 + $0x134] sm:$0xf0]  ;;  %v582_v50 = vld [vmem:[%s1302_s1 + $0x38] sm:$0xf0]  ;;  %v847_v51 = vld [vmem:[%s1302_s1 + $0x12c] sm:$0xf]  ;;  %v581_v54 = vor.u32 %v817_v45, %v580_v44 }
  0x29   :  { %469 = vmatpush.bf16.msrb.mxu1 %v789_v58  ;;  %482 = vmatpush.bf16.msrb.mxu2 %v665_v59  ;;  %v710_v52 = vld [vmem:[%s1302_s1 + $0x138] sm:$0xf0]  ;;  %v709_v55 = vor.u32 %v849_v48, %v708_v46  ;;  %v585_v57 = vor.u32 %v815_v49, %v582_v50  ;;  %v564_v58 = vld [vmem:[%s1302_s1 + $0x8] sm:$0xf]  ;;  %v813_v59 = vld [vmem:[%s1302_s1 + $0x14] sm:$0xf0] }
  0x2a   :  { %495 = vmatpush.bf16.msrb.mxu3 %v793_v63  ;;  %v692_v60 = vld [vmem:[%s1302_s1 + $0x108] sm:$0xf]  ;;  %v713_v61 = vor.u32 %v847_v51, %v710_v52  ;;  %v845_v62 = vld [vmem:[%s1302_s1 + $0x114] sm:$0xf0]  ;;  %v811_v63 = vld [vmem:[%s1302_s1 + $0xc] sm:$0xf]  ;;  %v565_v3 = vor.u32 %v813_v59, %v564_v58 }
  0x2b   :  { %v566_v0 = vld [vmem:[%s1302_s1 + $0x18] sm:$0xf0]  ;;  %v843_v1 = vld [vmem:[%s1302_s1 + $0x10c] sm:$0xf]  ;;  %v693_v4 = vor.u32 %v845_v62, %v692_v60 }
  0x2c   :  { %457 = vmatpush.bf16.msrb.mxu0 %v645_v5  ;;  %v694_v2 = vld [vmem:[%s1302_s1 + $0x118] sm:$0xf0]  ;;  %v569_v5 = vor.u32 %v811_v63, %v566_v0 }
  0x2d   :  { %470 = vmatpush.bf16.msrb.mxu1 %v773_v6  ;;  %483 = vmatpush.bf16.msrb.mxu2 %v649_v7  ;;  %v697_v6 = vor.u32 %v843_v1, %v694_v2 }
  0x2e   :  { %496 = vmatpush.bf16.msrb.mxu3 %v777_v11 }
  0x30   :  { %458 = vmatpush.bf16.msrb.mxu0 %v629_v17 }
  0x31   :  { %471 = vmatpush.bf16.msrb.mxu1 %v757_v18  ;;  %484 = vmatpush.bf16.msrb.mxu2 %v633_v19 }
  0x32   :  { %497 = vmatpush.bf16.msrb.mxu3 %v761_v23 }
  0x34   :  { %459 = vmatpush.bf16.msrb.mxu0 %v613_v29 }
  0x35   :  { %472 = vmatpush.bf16.msrb.mxu1 %v741_v30  ;;  %485 = vmatpush.bf16.msrb.mxu2 %v617_v31 }
  0x36   :  { %498 = vmatpush.bf16.msrb.mxu3 %v745_v35 }
  0x38   :  { %460 = vmatpush.bf16.msrb.mxu0 %v597_v41 }
  0x39   :  { %473 = vmatpush.bf16.msrb.mxu1 %v725_v42  ;;  %486 = vmatpush.bf16.msrb.mxu2 %v601_v43 }
  0x3a   :  { %499 = vmatpush.bf16.msrb.mxu3 %v729_v47 }
  0x3c   :  { %461 = vmatpush.bf16.msrb.mxu0 %v581_v54 }
  0x3d   :  { %474 = vmatpush.bf16.msrb.mxu1 %v709_v55  ;;  %487 = vmatpush.bf16.msrb.mxu2 %v585_v57 }
  0x3e   :  { %500 = vmatpush.bf16.msrb.mxu3 %v713_v61 }
  0x40   :  { %462 = vmatpush.bf16.msrb.mxu0 %v565_v3 }
  0x41   :  { %475 = vmatpush.bf16.msrb.mxu1 %v693_v4  ;;  %488 = vmatpush.bf16.msrb.mxu2 %v569_v5 }
  0x42   :  { %501 = vmatpush.bf16.msrb.mxu3 %v697_v6 }
  0x43   :  { %463 = vmatmul.bf16.vlgmr.msrb.gmra.mxu0 %v1128_v53 }
  0x44   :  { %476 = vmatmul.bf16.vlgmr.msrb.gmra.mxu1 %v1136_v56  ;;  %489 = vmatmul.bf16.vlgmr.msrb.gmra.mxu2 %v1128_v53 }
  0x45   :  { %502 = vmatmul.bf16.vlgmr.msrb.gmra.mxu3 %v1136_v56 }
  0xa0   :  { %v412_v7 = vpop.f32.mrf.mxu0 }
  0xa3   :  { %v425_v8 = vpop.f32.mrf.mxu1 }
  0xa4   :  { %v426_v17 = vadd.f32 %v425_v8, %v412_v7 }
  0xa7   :  { %v438_v9 = vpop.f32.mrf.mxu2 }
  0xa8   :  { %v414_v11 = vpop.f32.mrf.mxu0 }
  0xaa   :  { %v451_v10 = vpop.f32.mrf.mxu3 }
  0xab   :  { %v427_v12 = vpop.f32.mrf.mxu1  ;;  %v452_v18 = vadd.f32 %v451_v10, %v438_v9 }
  0xad   :  { %v507_v20 = vadd.f32 %v452_v18, %v426_v17 }
  0xaf   :  { %v440_v13 = vpop.f32.mrf.mxu2 }
  0xb2   :  { %v453_v14 = vpop.f32.mrf.mxu3 }
  0xc0   :  { %v464_v15 = vpop.f32.mrf.mxu0 }
  0xc1   :  { %v477_v16 = vpop.f32.mrf.mxu1 }
  0xc2   :  { %v478_v19 = vadd.f32 %v477_v16, %v464_v15 }
  0xc4   :  { %v508_v56 = vadd.f32 %v507_v20, %v478_v19 }
  0xc7   :  { %v490_v21 = vpop.f32.mrf.mxu2 }
  0xc8   :  { %v503_v22 = vpop.f32.mrf.mxu3  ;;  %v466_v23 = vpop.f32.mrf.mxu0 }
  0xc9   :  { %v504_v53 = vadd.f32 %v503_v22, %v490_v21  ;;  %v479_v24 = vpop.f32.mrf.mxu1 }
  0xcb   :  { %v509_v25 = vadd.f32 %v508_v56, %v504_v53 }
  0xcd   :  { %510 = vadd.xlane.f32.xlu0 %v509_v25 }
  0xcf   :  { %v492_v26 = vpop.f32.mrf.mxu2 }
  0xd0   :  { %v505_v27 = vpop.f32.mrf.mxu3 }
 0x140   :  { %v511_v28 = vpop.xlane.xlu0 %510 }
 0x141   :  { %v512_v29 = vmul.f32 0.001953125, %v511_v28 }
 0x143   :  { %v513_v30 = vsub.f32 %v426_v17, %v512_v29  ;;  %v514_v31 = vsub.f32 %v452_v18, %v512_v29  ;;  %v515_v32 = vsub.f32 %v478_v19, %v512_v29  ;;  %v516_v33 = vsub.f32 %v504_v53, %v512_v29 }
 0x145   :  { %v517_v34 = vmul.f32 %v513_v30, %v513_v30  ;;  %v518_v35 = vmul.f32 %v514_v31, %v514_v31  ;;  %v519_v36 = vmul.f32 %v515_v32, %v515_v32  ;;  %v520_v38 = vmul.f32 %v516_v33, %v516_v33 }
 0x147   :  { %v521_v37 = vadd.f32 %v518_v35, %v517_v34 }
 0x149   :  { %v522_v39 = vadd.f32 %v521_v37, %v519_v36 }
 0x14b   :  { %v523_v40 = vadd.f32 %v522_v39, %v520_v38 }
 0x14d   :  { %524 = vadd.xlane.f32.xlu0 %v523_v40 }
 0x1c0   :  { %v525_v41 = vpop.xlane.xlu0 %524 }
 0x1c1   :  { %v526_v42 = vmul.f32 0.001953125, %v525_v41 }
 0x1c3   :  { %v527_v43 = vadd.f32 1e-05, %v526_v42 }
 0x1c5   :  { %874 = vrsqrt.f32 %v527_v43  ;;  %vm534_vm1 = vweird.f32 %v527_v43 }
 0x1cb   :  { %v875_v44 = vpop.eup %874 }
 0x1cc   :  { %v529_v45 = vmul.f32 %v875_v44, %v527_v43  ;;  %vm535_vm0 = vweird.f32 %v875_v44 }
 0x1cd   :  { %vm536_vm2 = vmor %vm534_vm1, %vm535_vm0 }
 0x1ce   :  { %v530_v46 = vmul.f32 %v875_v44, %v529_v45 }
 0x1d0   :  { %v531_v47 = vmul.f32 0.5, %v530_v46 }
 0x1d2   :  { %v532_v48 = vsub.f32 1.5, %v531_v47 }
 0x1d4   :  { %v533_v49 = vmul.f32 %v875_v44, %v532_v48 }
 0x1d6   :  { %v537_v50 = vsel %vm536_vm2, %v875_v44, %v533_v49 }
 0x1d7   :  { %v538_v51 = vmul.f32 %v537_v50, %v513_v30  ;;  %v539_v52 = vmul.f32 %v537_v50, %v514_v31  ;;  %v540_v54 = vmul.f32 %v537_v50, %v515_v32  ;;  %v541_v55 = vmul.f32 %v537_v50, %v516_v33 }
 0x1d9   :  { %v542_v57 = vmax.f32 %v538_v51, 0.0  ;;  %v543_v58 = vmax.f32 %v539_v52, 0.0  ;;  %v544_v59 = vmax.f32 %v540_v54, 0.0  ;;  %v545_v60 = vmax.f32 %v541_v55, 0.0 }
 0x1db   :  { %546 = vst [vmem:[%s1304_s2] sm:$0xff] %v542_v57 }
 0x1dc   :  { %547 = vst [vmem:[%s1304_s2 + $0x8] sm:$0xff] %v543_v58 }
 0x1dd   :  { %548 = vst [vmem:[%s1304_s2 + $0x10] sm:$0xff] %v544_v59 }
 0x1de   :  { %549 = vst [vmem:[%s1304_s2 + $0x18] sm:$0xff] %v545_v60 }

// kernel: cycle_generator_forward.9
= control target key start
LH: loop header
LB: loop body
LE: loop exit
PB: predicated region body
PF: predicated region fallthrough
CT: control target
= control target key end

     0   :  { %s2548_s1 = inlined_call_operand.vmem [shape: bf16[128,2048], index: 1, kind: input, shape index: {}]   ;;  %s2549_s0 = inlined_call_operand.vmem [shape: bf16[8,128], index: 0, kind: input, shape index: {}]   ;;  %s2550_s2 = inlined_call_operand.vmem [shape: f32[8,2048], index: 2, kind: output, shape index: {}]  }
   0x1   :  { %v1474_v0 = vld [vmem:[%s2548_s1 + $0x380] sm:$0xf]  ;;  %v1648_v2 = vld [vmem:[%s2548_s1 + $0x384] sm:$0xf]  ;;  %v1482_v5 = vld [vmem:[%s2548_s1 + $0x388] sm:$0xf] }
   0x2   :  { %v1656_v1 = vld [vmem:[%s2548_s1 + $0x3bc] sm:$0xf0]  ;;  %v1476_v4 = vld [vmem:[%s2548_s1 + $0x3c0] sm:$0xf0]  ;;  %v1657_v6 = vld [vmem:[%s2548_s1 + $0x3c4] sm:$0xf0] }
   0x3   :  { %v1475_v3 = vor.u32 %v1656_v1, %v1474_v0  ;;  %v1479_v7 = vor.u32 %v1648_v2, %v1476_v4  ;;  %v1483_v8 = vor.u32 %v1657_v6, %v1482_v5  ;;  %v1649_v9 = vld [vmem:[%s2548_s1 + $0x38c] sm:$0xf]  ;;  %v1410_v11 = vld [vmem:[%s2548_s1 + $0x300] sm:$0xf]  ;;  %v1632_v14 = vld [vmem:[%s2548_s1 + $0x304] sm:$0xf] }
   0x4   :  { %v1484_v10 = vld [vmem:[%s2548_s1 + $0x3c8] sm:$0xf0]  ;;  %v1640_v13 = vld [vmem:[%s2548_s1 + $0x33c] sm:$0xf0]  ;;  %v1412_v15 = vld [vmem:[%s2548_s1 + $0x340] sm:$0xf0] }
   0x5   :  { %780 = vmatpush.bf16.msra.mxu0 %v1475_v3  ;;  %v1487_v12 = vor.u32 %v1649_v9, %v1484_v10  ;;  %793 = vmatpush.bf16.msra.mxu1 %v1479_v7  ;;  %v1411_v16 = vor.u32 %v1640_v13, %v1410_v11  ;;  %v1415_v17 = vor.u32 %v1632_v14, %v1412_v15  ;;  %v1418_v18 = vld [vmem:[%s2548_s1 + $0x308] sm:$0xf]  ;;  %v1633_v20 = vld [vmem:[%s2548_s1 + $0x30c] sm:$0xf]  ;;  %v1346_v23 = vld [vmem:[%s2548_s1 + $0x280] sm:$0xf] }
   0x6   :  { %806 = vmatpush.bf16.msra.mxu2 %v1483_v8  ;;  %v1641_v19 = vld [vmem:[%s2548_s1 + $0x344] sm:$0xf0]  ;;  %v1420_v22 = vld [vmem:[%s2548_s1 + $0x348] sm:$0xf0]  ;;  %v1624_v24 = vld [vmem:[%s2548_s1 + $0x2bc] sm:$0xf0] }
   0x7   :  { %819 = vmatpush.bf16.msra.mxu3 %v1487_v12  ;;  %v1419_v21 = vor.u32 %v1641_v19, %v1418_v18  ;;  %v1423_v25 = vor.u32 %v1633_v20, %v1420_v22  ;;  %v1616_v26 = vld [vmem:[%s2548_s1 + $0x284] sm:$0xf]  ;;  %v1354_v28 = vld [vmem:[%s2548_s1 + $0x288] sm:$0xf]  ;;  %v1347_v29 = vor.u32 %v1624_v24, %v1346_v23  ;;  %v1617_v31 = vld [vmem:[%s2548_s1 + $0x28c] sm:$0xf] }
   0x8   :  { %v1348_v27 = vld [vmem:[%s2548_s1 + $0x2c0] sm:$0xf0]  ;;  %v1625_v30 = vld [vmem:[%s2548_s1 + $0x2c4] sm:$0xf0]  ;;  %v1356_v32 = vld [vmem:[%s2548_s1 + $0x2c8] sm:$0xf0] }
   0x9   :  { %781 = vmatpush.bf16.msra.mxu0 %v1411_v16  ;;  %794 = vmatpush.bf16.msra.mxu1 %v1415_v17  ;;  %v1351_v33 = vor.u32 %v1616_v26, %v1348_v27  ;;  %v1355_v34 = vor.u32 %v1625_v30, %v1354_v28  ;;  %v1282_v35 = vld [vmem:[%s2548_s1 + $0x200] sm:$0xf]  ;;  %v1600_v37 = vld [vmem:[%s2548_s1 + $0x204] sm:$0xf]  ;;  %v1359_v38 = vor.u32 %v1617_v31, %v1356_v32  ;;  %v1290_v40 = vld [vmem:[%s2548_s1 + $0x208] sm:$0xf] }
   0xa   :  { %807 = vmatpush.bf16.msra.mxu2 %v1419_v21  ;;  %v1608_v36 = vld [vmem:[%s2548_s1 + $0x23c] sm:$0xf0]  ;;  %v1284_v39 = vld [vmem:[%s2548_s1 + $0x240] sm:$0xf0]  ;;  %v1609_v41 = vld [vmem:[%s2548_s1 + $0x244] sm:$0xf0] }
   0xb   :  { %820 = vmatpush.bf16.msra.mxu3 %v1423_v25  ;;  %v1601_v42 = vld [vmem:[%s2548_s1 + $0x20c] sm:$0xf]  ;;  %v1283_v44 = vor.u32 %v1608_v36, %v1282_v35  ;;  %v1287_v45 = vor.u32 %v1600_v37, %v1284_v39  ;;  %v1291_v46 = vor.u32 %v1609_v41, %v1290_v40  ;;  %v1218_v47 = vld [vmem:[%s2548_s1 + $0x180] sm:$0xf]  ;;  %v1584_v49 = vld [vmem:[%s2548_s1 + $0x184] sm:$0xf] }
   0xc   :  { %v1292_v43 = vld [vmem:[%s2548_s1 + $0x248] sm:$0xf0]  ;;  %v1592_v48 = vld [vmem:[%s2548_s1 + $0x1bc] sm:$0xf0]  ;;  %v1220_v51 = vld [vmem:[%s2548_s1 + $0x1c0] sm:$0xf0] }
   0xd   :  { %782 = vmatpush.bf16.msra.mxu0 %v1347_v29  ;;  %795 = vmatpush.bf16.msra.mxu1 %v1351_v33  ;;  %v1295_v50 = vor.u32 %v1601_v42, %v1292_v43  ;;  %v1226_v52 = vld [vmem:[%s2548_s1 + $0x188] sm:$0xf]  ;;  %v1585_v54 = vld [vmem:[%s2548_s1 + $0x18c] sm:$0xf]  ;;  %v1219_v56 = vor.u32 %v1592_v48, %v1218_v47  ;;  %v1223_v57 = vor.u32 %v1584_v49, %v1220_v51  ;;  %v1154_v59 = vld [vmem:[%s2548_s1 + $0x100] sm:$0xf] }
   0xe   :  { %808 = vmatpush.bf16.msra.mxu2 %v1355_v34  ;;  %v1593_v53 = vld [vmem:[%s2548_s1 + $0x1c4] sm:$0xf0]  ;;  %v1228_v55 = vld [vmem:[%s2548_s1 + $0x1c8] sm:$0xf0]  ;;  %v1576_v60 = vld [vmem:[%s2548_s1 + $0x13c] sm:$0xf0] }
   0xf   :  { %821 = vmatpush.bf16.msra.mxu3 %v1359_v38  ;;  %v1227_v58 = vor.u32 %v1593_v53, %v1226_v52  ;;  %v1568_v61 = vld [vmem:[%s2548_s1 + $0x104] sm:$0xf]  ;;  %v1231_v62 = vor.u32 %v1585_v54, %v1228_v55  ;;  %v1162_v0 = vld [vmem:[%s2548_s1 + $0x108] sm:$0xf]  ;;  %v1569_v2 = vld [vmem:[%s2548_s1 + $0x10c] sm:$0xf]  ;;  %v1155_v4 = vor.u32 %v1576_v60, %v1154_v59 }
  0x10   :  { %v1156_v63 = vld [vmem:[%s2548_s1 + $0x140] sm:$0xf0]  ;;  %v1577_v1 = vld [vmem:[%s2548_s1 + $0x144] sm:$0xf0]  ;;  %v1164_v3 = vld [vmem:[%s2548_s1 + $0x148] sm:$0xf0] }
  0x11   :  { %783 = vmatpush.bf16.msra.mxu0 %v1283_v44  ;;  %796 = vmatpush.bf16.msra.mxu1 %v1287_v45  ;;  %v1159_v5 = vor.u32 %v1568_v61, %v1156_v63  ;;  %v1163_v6 = vor.u32 %v1577_v1, %v1162_v0  ;;  %v1090_v7 = vld [vmem:[%s2548_s1 + $0x80] sm:$0xf]  ;;  %v1552_v9 = vld [vmem:[%s2548_s1 + $0x84] sm:$0xf]  ;;  %v1167_v10 = vor.u32 %v1569_v2, %v1164_v3  ;;  %v1098_v12 = vld [vmem:[%s2548_s1 + $0x88] sm:$0xf] }
  0x12   :  { %809 = vmatpush.bf16.msra.mxu2 %v1291_v46  ;;  %v1560_v8 = vld [vmem:[%s2548_s1 + $0xbc] sm:$0xf0]  ;;  %v1092_v11 = vld [vmem:[%s2548_s1 + $0xc0] sm:$0xf0]  ;;  %v1561_v13 = vld [vmem:[%s2548_s1 + $0xc4] sm:$0xf0] }
  0x13   :  { %822 = vmatpush.bf16.msra.mxu3 %v1295_v50  ;;  %v1553_v14 = vld [vmem:[%s2548_s1 + $0x8c] sm:$0xf]  ;;  %v1091_v16 = vor.u32 %v1560_v8, %v1090_v7  ;;  %v1026_v17 = vld [vmem:[%s2548_s1] sm:$0xf]  ;;  %v1095_v19 = vor.u32 %v1552_v9, %v1092_v11  ;;  %v1099_v20 = vor.u32 %v1561_v13, %v1098_v12  ;;  %v1536_v21 = vld [vmem:[%s2548_s1 + $0x4] sm:$0xf] }
  0x14   :  { %v1100_v15 = vld [vmem:[%s2548_s1 + $0xc8] sm:$0xf0]  ;;  %v1544_v18 = vld [vmem:[%s2548_s1 + $0x3c] sm:$0xf0]  ;;  %v1028_v22 = vld [vmem:[%s2548_s1 + $0x40] sm:$0xf0] }
  0x15   :  { %784 = vmatpush.bf16.msra.mxu0 %v1219_v56  ;;  %797 = vmatpush.bf16.msra.mxu1 %v1223_v57  ;;  %v1034_v23 = vld [vmem:[%s2548_s1 + $0x8] sm:$0xf]  ;;  %v1103_v24 = vor.u32 %v1553_v14, %v1100_v15  ;;  %v1537_v26 = vld [vmem:[%s2548_s1 + $0xc] sm:$0xf]  ;;  %v1490_v28 = vld [vmem:[%s2548_s1 + $0x390] sm:$0xf]  ;;  %v1027_v31 = vor.u32 %v1544_v18, %v1026_v17  ;;  %v1031_v35 = vor.u32 %v1536_v21, %v1028_v22 }
  0x16   :  { %810 = vmatpush.bf16.msra.mxu2 %v1227_v58  ;;  %v1545_v25 = vld [vmem:[%s2548_s1 + $0x44] sm:$0xf0]  ;;  %v1036_v27 = vld [vmem:[%s2548_s1 + $0x48] sm:$0xf0]  ;;  %v1658_v29 = vld [vmem:[%s2548_s1 + $0x3cc] sm:$0xf0] }
  0x17   :  { %823 = vmatpush.bf16.msra.mxu3 %v1231_v62  ;;  %v1650_v30 = vld [vmem:[%s2548_s1 + $0x394] sm:$0xf]  ;;  %v1498_v33 = vld [vmem:[%s2548_s1 + $0x398] sm:$0xf]  ;;  %v1035_v36 = vor.u32 %v1545_v25, %v1034_v23  ;;  %v1651_v37 = vld [vmem:[%s2548_s1 + $0x39c] sm:$0xf]  ;;  %v1039_v39 = vor.u32 %v1537_v26, %v1036_v27  ;;  %v1491_v40 = vor.u32 %v1658_v29, %v1490_v28 }
  0x18   :  { %v1492_v32 = vld [vmem:[%s2548_s1 + $0x3d0] sm:$0xf0]  ;;  %v1659_v34 = vld [vmem:[%s2548_s1 + $0x3d4] sm:$0xf0]  ;;  %v1500_v38 = vld [vmem:[%s2548_s1 + $0x3d8] sm:$0xf0] }
  0x19   :  { %785 = vmatpush.bf16.msra.mxu0 %v1155_v4  ;;  %798 = vmatpush.bf16.msra.mxu1 %v1159_v5  ;;  %v1495_v41 = vor.u32 %v1650_v30, %v1492_v32  ;;  %v1499_v42 = vor.u32 %v1659_v34, %v1498_v33  ;;  %v1426_v43 = vld [vmem:[%s2548_s1 + $0x310] sm:$0xf]  ;;  %v1634_v45 = vld [vmem:[%s2548_s1 + $0x314] sm:$0xf]  ;;  %v1503_v46 = vor.u32 %v1651_v37, %v1500_v38  ;;  %v1434_v48 = vld [vmem:[%s2548_s1 + $0x318] sm:$0xf] }
  0x1a   :  { %811 = vmatpush.bf16.msra.mxu2 %v1163_v6  ;;  %v1642_v44 = vld [vmem:[%s2548_s1 + $0x34c] sm:$0xf0]  ;;  %v1428_v47 = vld [vmem:[%s2548_s1 + $0x350] sm:$0xf0]  ;;  %v1643_v49 = vld [vmem:[%s2548_s1 + $0x354] sm:$0xf0] }
  0x1b   :  { %824 = vmatpush.bf16.msra.mxu3 %v1167_v10  ;;  %v1635_v50 = vld [vmem:[%s2548_s1 + $0x31c] sm:$0xf]  ;;  %v1427_v52 = vor.u32 %v1642_v44, %v1426_v43  ;;  %v1431_v53 = vor.u32 %v1634_v45, %v1428_v47  ;;  %v1435_v54 = vor.u32 %v1643_v49, %v1434_v48  ;;  %v1362_v55 = vld [vmem:[%s2548_s1 + $0x290] sm:$0xf]  ;;  %v1618_v57 = vld [vmem:[%s2548_s1 + $0x294] sm:$0xf] }
  0x1c   :  { %v1436_v51 = vld [vmem:[%s2548_s1 + $0x358] sm:$0xf0]  ;;  %v1626_v56 = vld [vmem:[%s2548_s1 + $0x2cc] sm:$0xf0]  ;;  %v1364_v59 = vld [vmem:[%s2548_s1 + $0x2d0] sm:$0xf0] }
  0x1d   :  { %786 = vmatpush.bf16.msra.mxu0 %v1091_v16  ;;  %799 = vmatpush.bf16.msra.mxu1 %v1095_v19  ;;  %v1439_v58 = vor.u32 %v1635_v50, %v1436_v51  ;;  %v1370_v60 = vld [vmem:[%s2548_s1 + $0x298] sm:$0xf]  ;;  %v1619_v62 = vld [vmem:[%s2548_s1 + $0x29c] sm:$0xf]  ;;  %v1363_v0 = vor.u32 %v1626_v56, %v1362_v55  ;;  %v1978_v1 = vld [vmem:[%s2549_s0] sm:$0xf]  ;;  %v1367_v2 = vor.u32 %v1618_v57, %v1364_v59 }
  0x1e   :  { %812 = vmatpush.bf16.msra.mxu2 %v1099_v20  ;;  %v1627_v61 = vld [vmem:[%s2548_s1 + $0x2d4] sm:$0xf0]  ;;  %v1372_v63 = vld [vmem:[%s2548_s1 + $0x2d8] sm:$0xf0]  ;;  %v1298_v4 = vld [vmem:[%s2548_s1 + $0x210] sm:$0xf] }
  0x1f   :  { %825 = vmatpush.bf16.msra.mxu3 %v1103_v24  ;;  %v1371_v3 = vor.u32 %v1627_v61, %v1370_v60  ;;  %v1610_v5 = vld [vmem:[%s2548_s1 + $0x24c] sm:$0xf0]  ;;  %v1602_v6 = vld [vmem:[%s2548_s1 + $0x214] sm:$0xf]  ;;  %v1375_v7 = vor.u32 %v1619_v62, %v1372_v63  ;;  %v1306_v9 = vld [vmem:[%s2548_s1 + $0x218] sm:$0xf] }
  0x20   :  { %v1300_v8 = vld [vmem:[%s2548_s1 + $0x250] sm:$0xf0]  ;;  %v1611_v10 = vld [vmem:[%s2548_s1 + $0x254] sm:$0xf0]  ;;  %v1603_v11 = vld [vmem:[%s2548_s1 + $0x21c] sm:$0xf]  ;;  %v1299_v13 = vor.u32 %v1610_v5, %v1298_v4 }
  0x21   :  { %787 = vmatpush.bf16.msra.mxu0 %v1027_v31  ;;  %800 = vmatpush.bf16.msra.mxu1 %v1031_v35  ;;  %v1308_v12 = vld [vmem:[%s2548_s1 + $0x258] sm:$0xf0]  ;;  %v1303_v14 = vor.u32 %v1602_v6, %v1300_v8  ;;  %v1307_v15 = vor.u32 %v1611_v10, %v1306_v9  ;;  %v1234_v16 = vld [vmem:[%s2548_s1 + $0x190] sm:$0xf]  ;;  %v1586_v18 = vld [vmem:[%s2548_s1 + $0x194] sm:$0xf] }
  0x22   :  { %813 = vmatpush.bf16.msra.mxu2 %v1035_v36  ;;  %v1594_v17 = vld [vmem:[%s2548_s1 + $0x1cc] sm:$0xf0]  ;;  %v1311_v19 = vor.u32 %v1603_v11, %v1308_v12  ;;  %v1236_v20 = vld [vmem:[%s2548_s1 + $0x1d0] sm:$0xf0]  ;;  %v1242_v21 = vld [vmem:[%s2548_s1 + $0x198] sm:$0xf] }
  0x23   :  { %826 = vmatpush.bf16.msra.mxu3 %v1039_v39  ;;  %v1595_v22 = vld [vmem:[%s2548_s1 + $0x1d4] sm:$0xf0]  ;;  %v1587_v23 = vld [vmem:[%s2548_s1 + $0x19c] sm:$0xf]  ;;  %v1235_v25 = vor.u32 %v1594_v17, %v1234_v16  ;;  %v1239_v26 = vor.u32 %v1586_v18, %v1236_v20  ;;  %v1170_v28 = vld [vmem:[%s2548_s1 + $0x110] sm:$0xf] }
  0x24   :  { %788 = vmatmul.bf16.vlgmr.msra.gmra.mxu0 %v1978_v1  ;;  %801 = vmatmul.bf16.vlgmr.msra.gmra.mxu1 %v1978_v1  ;;  %v1244_v24 = vld [vmem:[%s2548_s1 + $0x1d8] sm:$0xf0]  ;;  %v1243_v27 = vor.u32 %v1595_v22, %v1242_v21  ;;  %v1578_v29 = vld [vmem:[%s2548_s1 + $0x14c] sm:$0xf0]  ;;  %v1570_v30 = vld [vmem:[%s2548_s1 + $0x114] sm:$0xf] }
  0x25   :  { %832 = vmatpush.bf16.msrb.mxu0 %v1491_v40  ;;  %845 = vmatpush.bf16.msrb.mxu1 %v1495_v41  ;;  %v1247_v31 = vor.u32 %v1587_v23, %v1244_v24  ;;  %v1172_v32 = vld [vmem:[%s2548_s1 + $0x150] sm:$0xf0]  ;;  %v1178_v33 = vld [vmem:[%s2548_s1 + $0x118] sm:$0xf]  ;;  %v1571_v35 = vld [vmem:[%s2548_s1 + $0x11c] sm:$0xf]  ;;  %v1171_v37 = vor.u32 %v1578_v29, %v1170_v28 }
  0x26   :  { %858 = vmatpush.bf16.msrb.mxu2 %v1499_v42  ;;  %827 = vmatmul.bf16.vlgmr.msra.gmra.mxu3 %v1978_v1  ;;  %v1579_v34 = vld [vmem:[%s2548_s1 + $0x154] sm:$0xf0]  ;;  %v1180_v36 = vld [vmem:[%s2548_s1 + $0x158] sm:$0xf0]  ;;  %v1175_v38 = vor.u32 %v1570_v30, %v1172_v32  ;;  %v1106_v40 = vld [vmem:[%s2548_s1 + $0x90] sm:$0xf] }
  0x27   :  { %871 = vmatpush.bf16.msrb.mxu3 %v1503_v46  ;;  %814 = vmatmul.bf16.vlgmr.msra.gmra.mxu2 %v1978_v1  ;;  %v1179_v39 = vor.u32 %v1579_v34, %v1178_v33  ;;  %v1562_v41 = vld [vmem:[%s2548_s1 + $0xcc] sm:$0xf0]  ;;  %v1554_v42 = vld [vmem:[%s2548_s1 + $0x94] sm:$0xf]  ;;  %v1183_v43 = vor.u32 %v1571_v35, %v1180_v36  ;;  %v1114_v45 = vld [vmem:[%s2548_s1 + $0x98] sm:$0xf] }
  0x28   :  { %v1108_v44 = vld [vmem:[%s2548_s1 + $0xd0] sm:$0xf0]  ;;  %v1563_v46 = vld [vmem:[%s2548_s1 + $0xd4] sm:$0xf0]  ;;  %v1555_v47 = vld [vmem:[%s2548_s1 + $0x9c] sm:$0xf]  ;;  %v1107_v49 = vor.u32 %v1562_v41, %v1106_v40 }
  0x29   :  { %833 = vmatpush.bf16.msrb.mxu0 %v1427_v52  ;;  %846 = vmatpush.bf16.msrb.mxu1 %v1431_v53  ;;  %v1116_v48 = vld [vmem:[%s2548_s1 + $0xd8] sm:$0xf0]  ;;  %v1042_v50 = vld [vmem:[%s2548_s1 + $0x10] sm:$0xf]  ;;  %v1111_v52 = vor.u32 %v1554_v42, %v1108_v44  ;;  %v1115_v53 = vor.u32 %v1563_v46, %v1114_v45  ;;  %v1044_v55 = vld [vmem:[%s2548_s1 + $0x50] sm:$0xf0] }
  0x2a   :  { %859 = vmatpush.bf16.msrb.mxu2 %v1435_v54  ;;  %v1546_v51 = vld [vmem:[%s2548_s1 + $0x4c] sm:$0xf0]  ;;  %v1538_v54 = vld [vmem:[%s2548_s1 + $0x14] sm:$0xf]  ;;  %v1050_v56 = vld [vmem:[%s2548_s1 + $0x18] sm:$0xf]  ;;  %v1119_v57 = vor.u32 %v1555_v47, %v1116_v48 }
  0x2b   :  { %872 = vmatpush.bf16.msrb.mxu3 %v1439_v58  ;;  %v1547_v58 = vld [vmem:[%s2548_s1 + $0x54] sm:$0xf0]  ;;  %v1539_v59 = vld [vmem:[%s2548_s1 + $0x1c] sm:$0xf]  ;;  %v1506_v61 = vld [vmem:[%s2548_s1 + $0x3a0] sm:$0xf]  ;;  %v1047_v5 = vor.u32 %v1538_v54, %v1044_v55 }
  0x2c   :  { %v1052_v60 = vld [vmem:[%s2548_s1 + $0x58] sm:$0xf0]  ;;  %v1660_v62 = vld [vmem:[%s2548_s1 + $0x3dc] sm:$0xf0]  ;;  %v1652_v63 = vld [vmem:[%s2548_s1 + $0x3a4] sm:$0xf]  ;;  %v1051_v6 = vor.u32 %v1547_v58, %v1050_v56 }
  0x2d   :  { %834 = vmatpush.bf16.msrb.mxu0 %v1363_v0  ;;  %847 = vmatpush.bf16.msrb.mxu1 %v1367_v2  ;;  %v1043_v0 = vor.u32 %v1546_v51, %v1042_v50  ;;  %v1508_v2 = vld [vmem:[%s2548_s1 + $0x3e0] sm:$0xf0]  ;;  %v1661_v4 = vld [vmem:[%s2548_s1 + $0x3e4] sm:$0xf0]  ;;  %v1516_v8 = vld [vmem:[%s2548_s1 + $0x3e8] sm:$0xf0]  ;;  %v1055_v9 = vor.u32 %v1539_v59, %v1052_v60  ;;  %v1507_v10 = vor.u32 %v1660_v62, %v1506_v61 }
  0x2e   :  { %860 = vmatpush.bf16.msrb.mxu2 %v1371_v3  ;;  %v1514_v3 = vld [vmem:[%s2548_s1 + $0x3a8] sm:$0xf]  ;;  %v1511_v11 = vor.u32 %v1652_v63, %v1508_v2  ;;  %v1444_v17 = vld [vmem:[%s2548_s1 + $0x360] sm:$0xf0]  ;;  %v1637_v20 = vld [vmem:[%s2548_s1 + $0x32c] sm:$0xf] }
  0x2f   :  { %873 = vmatpush.bf16.msrb.mxu3 %v1375_v7  ;;  %v1653_v7 = vld [vmem:[%s2548_s1 + $0x3ac] sm:$0xf]  ;;  %v1515_v12 = vor.u32 %v1661_v4, %v1514_v3  ;;  %v1450_v18 = vld [vmem:[%s2548_s1 + $0x328] sm:$0xf]  ;;  %v1380_v29 = vld [vmem:[%s2548_s1 + $0x2e0] sm:$0xf0] }
  0x30   :  { %v1519_v16 = vor.u32 %v1653_v7, %v1516_v8  ;;  %v1452_v21 = vld [vmem:[%s2548_s1 + $0x368] sm:$0xf0]  ;;  %v1386_v30 = vld [vmem:[%s2548_s1 + $0x2a8] sm:$0xf]  ;;  %v1316_v41 = vld [vmem:[%s2548_s1 + $0x260] sm:$0xf0] }
  0x31   :  { %835 = vmatpush.bf16.msrb.mxu0 %v1299_v13  ;;  %848 = vmatpush.bf16.msrb.mxu1 %v1303_v14  ;;  %v1442_v13 = vld [vmem:[%s2548_s1 + $0x320] sm:$0xf]  ;;  %v1455_v28 = vor.u32 %v1637_v20, %v1452_v21  ;;  %v1621_v32 = vld [vmem:[%s2548_s1 + $0x2ac] sm:$0xf]  ;;  %v1322_v42 = vld [vmem:[%s2548_s1 + $0x228] sm:$0xf] }
  0x32   :  { %861 = vmatpush.bf16.msrb.mxu2 %v1307_v15  ;;  %v1644_v14 = vld [vmem:[%s2548_s1 + $0x35c] sm:$0xf0]  ;;  %v1636_v15 = vld [vmem:[%s2548_s1 + $0x324] sm:$0xf]  ;;  %v1388_v33 = vld [vmem:[%s2548_s1 + $0x2e8] sm:$0xf0] }
  0x33   :  { %874 = vmatpush.bf16.msrb.mxu3 %v1311_v19  ;;  %v1645_v19 = vld [vmem:[%s2548_s1 + $0x364] sm:$0xf0]  ;;  %v1443_v22 = vor.u32 %v1644_v14, %v1442_v13  ;;  %v1447_v23 = vor.u32 %v1636_v15, %v1444_v17  ;;  %v1391_v40 = vor.u32 %v1621_v32, %v1388_v33  ;;  %v1605_v44 = vld [vmem:[%s2548_s1 + $0x22c] sm:$0xf]  ;;  %v1596_v50 = vld [vmem:[%s2548_s1 + $0x1dc] sm:$0xf0] }
  0x34   :  { %v1451_v24 = vor.u32 %v1645_v19, %v1450_v18  ;;  %v1324_v45 = vld [vmem:[%s2548_s1 + $0x268] sm:$0xf0]  ;;  %v1588_v51 = vld [vmem:[%s2548_s1 + $0x1a4] sm:$0xf]  ;;  %v1258_v54 = vld [vmem:[%s2548_s1 + $0x1a8] sm:$0xf] }
  0x35   :  { %836 = vmatpush.bf16.msrb.mxu0 %v1235_v25  ;;  %849 = vmatpush.bf16.msrb.mxu1 %v1239_v26  ;;  %v1378_v25 = vld [vmem:[%s2548_s1 + $0x2a0] sm:$0xf]  ;;  %v1597_v55 = vld [vmem:[%s2548_s1 + $0x1e4] sm:$0xf0]  ;;  %v1589_v56 = vld [vmem:[%s2548_s1 + $0x1ac] sm:$0xf] }
  0x36   :  { %862 = vmatpush.bf16.msrb.mxu2 %v1243_v27  ;;  %v1628_v26 = vld [vmem:[%s2548_s1 + $0x2dc] sm:$0xf0]  ;;  %v1620_v27 = vld [vmem:[%s2548_s1 + $0x2a4] sm:$0xf]  ;;  %v1259_v60 = vor.u32 %v1597_v55, %v1258_v54  ;;  %v1194_v3 = vld [vmem:[%s2548_s1 + $0x128] sm:$0xf] }
  0x37   :  { %875 = vmatpush.bf16.msrb.mxu3 %v1247_v31  ;;  %v1629_v31 = vld [vmem:[%s2548_s1 + $0x2e4] sm:$0xf0]  ;;  %v1379_v34 = vor.u32 %v1628_v26, %v1378_v25  ;;  %v1383_v35 = vor.u32 %v1620_v27, %v1380_v29  ;;  %v1186_v61 = vld [vmem:[%s2548_s1 + $0x120] sm:$0xf]  ;;  %v1572_v63 = vld [vmem:[%s2548_s1 + $0x124] sm:$0xf] }
  0x38   :  { %v1387_v36 = vor.u32 %v1629_v31, %v1386_v30  ;;  %v1580_v62 = vld [vmem:[%s2548_s1 + $0x15c] sm:$0xf0]  ;;  %v1188_v2 = vld [vmem:[%s2548_s1 + $0x160] sm:$0xf0]  ;;  %v1581_v4 = vld [vmem:[%s2548_s1 + $0x164] sm:$0xf0] }
  0x39   :  { %837 = vmatpush.bf16.msrb.mxu0 %v1171_v37  ;;  %850 = vmatpush.bf16.msrb.mxu1 %v1175_v38  ;;  %v1314_v37 = vld [vmem:[%s2548_s1 + $0x220] sm:$0xf]  ;;  %v1187_v7 = vor.u32 %v1580_v62, %v1186_v61  ;;  %v1191_v8 = vor.u32 %v1572_v63, %v1188_v2  ;;  %v1124_v14 = vld [vmem:[%s2548_s1 + $0xe0] sm:$0xf0]  ;;  %v1130_v15 = vld [vmem:[%s2548_s1 + $0xa8] sm:$0xf] }
  0x3a   :  { %863 = vmatpush.bf16.msrb.mxu2 %v1179_v39  ;;  %v1612_v38 = vld [vmem:[%s2548_s1 + $0x25c] sm:$0xf0]  ;;  %v1604_v39 = vld [vmem:[%s2548_s1 + $0x224] sm:$0xf]  ;;  %v1557_v17 = vld [vmem:[%s2548_s1 + $0xac] sm:$0xf] }
  0x3b   :  { %876 = vmatpush.bf16.msrb.mxu3 %v1183_v43  ;;  %v1613_v43 = vld [vmem:[%s2548_s1 + $0x264] sm:$0xf0]  ;;  %v1315_v46 = vor.u32 %v1612_v38, %v1314_v37  ;;  %v1319_v47 = vor.u32 %v1604_v39, %v1316_v41  ;;  %v1132_v18 = vld [vmem:[%s2548_s1 + $0xe8] sm:$0xf0]  ;;  %v1058_v20 = vld [vmem:[%s2548_s1 + $0x20] sm:$0xf] }
  0x3c   :  { %v1323_v48 = vor.u32 %v1613_v43, %v1322_v42  ;;  %v1548_v21 = vld [vmem:[%s2548_s1 + $0x5c] sm:$0xf0]  ;;  %v1060_v25 = vld [vmem:[%s2548_s1 + $0x60] sm:$0xf0]  ;;  %v1066_v26 = vld [vmem:[%s2548_s1 + $0x28] sm:$0xf]  ;;  %v1135_v27 = vor.u32 %v1557_v17, %v1132_v18 }
  0x3d   :  { %838 = vmatpush.bf16.msrb.mxu0 %v1107_v49  ;;  %851 = vmatpush.bf16.msrb.mxu1 %v1111_v52  ;;  %v1250_v49 = vld [vmem:[%s2548_s1 + $0x1a0] sm:$0xf]  ;;  %v1327_v52 = vor.u32 %v1605_v44, %v1324_v45  ;;  %v1541_v29 = vld [vmem:[%s2548_s1 + $0x2c] sm:$0xf]  ;;  %v1522_v31 = vld [vmem:[%s2548_s1 + $0x3b0] sm:$0xf] }
  0x3e   :  { %864 = vmatpush.bf16.msrb.mxu2 %v1115_v53  ;;  %v1252_v53 = vld [vmem:[%s2548_s1 + $0x1e0] sm:$0xf0]  ;;  %v1251_v58 = vor.u32 %v1596_v50, %v1250_v49  ;;  %v1068_v30 = vld [vmem:[%s2548_s1 + $0x68] sm:$0xf0]  ;;  %v1662_v32 = vld [vmem:[%s2548_s1 + $0x3ec] sm:$0xf0] }
  0x3f   :  { %877 = vmatpush.bf16.msrb.mxu3 %v1119_v57  ;;  %v1260_v57 = vld [vmem:[%s2548_s1 + $0x1e8] sm:$0xf0]  ;;  %v1255_v59 = vor.u32 %v1588_v51, %v1252_v53  ;;  %v1654_v33 = vld [vmem:[%s2548_s1 + $0x3b4] sm:$0xf]  ;;  %v1663_v37 = vld [vmem:[%s2548_s1 + $0x3f4] sm:$0xf0]  ;;  %v1071_v42 = vor.u32 %v1541_v29, %v1068_v30  ;;  %v1523_v43 = vor.u32 %v1662_v32, %v1522_v31 }
  0x40   :  { %v1532_v41 = vld [vmem:[%s2548_s1 + $0x3f8] sm:$0xf0]  ;;  %v1460_v50 = vld [vmem:[%s2548_s1 + $0x370] sm:$0xf0]  ;;  %v1466_v51 = vld [vmem:[%s2548_s1 + $0x338] sm:$0xf] }
  0x41   :  { %839 = vmatpush.bf16.msrb.mxu0 %v1043_v0  ;;  %852 = vmatpush.bf16.msrb.mxu1 %v1047_v5  ;;  %v1263_v0 = vor.u32 %v1589_v56, %v1260_v57  ;;  %v1573_v5 = vld [vmem:[%s2548_s1 + $0x12c] sm:$0xf]  ;;  %v1639_v53 = vld [vmem:[%s2548_s1 + $0x33c] sm:$0xf]  ;;  %v1396_v62 = vld [vmem:[%s2548_s1 + $0x2f0] sm:$0xf0] }
  0x42   :  { %865 = vmatpush.bf16.msrb.mxu2 %v1051_v6  ;;  %v1196_v6 = vld [vmem:[%s2548_s1 + $0x168] sm:$0xf0]  ;;  %v1468_v54 = vld [vmem:[%s2548_s1 + $0x378] sm:$0xf0]  ;;  %v1402_v63 = vld [vmem:[%s2548_s1 + $0x2b8] sm:$0xf] }
  0x43   :  { %878 = vmatpush.bf16.msrb.mxu3 %v1055_v9  ;;  %v1195_v9 = vor.u32 %v1581_v4, %v1194_v3  ;;  %v1199_v13 = vor.u32 %v1573_v5, %v1196_v6  ;;  %v1471_v61 = vor.u32 %v1639_v53, %v1468_v54  ;;  %v1623_v2 = vld [vmem:[%s2548_s1 + $0x2bc] sm:$0xf]  ;;  %v1202_v31 = vld [vmem:[%s2548_s1 + $0x130] sm:$0xf] }
  0x44   :  { %840 = vmatmul.bf16.vlgmr.msrb.gmra.mxu0 %v1978_v1  ;;  %853 = vmatmul.bf16.vlgmr.msrb.gmra.mxu1 %v1978_v1  ;;  %v1404_v3 = vld [vmem:[%s2548_s1 + $0x2f8] sm:$0xf0]  ;;  %v1582_v32 = vld [vmem:[%s2548_s1 + $0x16c] sm:$0xf0] }
  0x45   :  { %884 = vmatpush.bf16.msra.mxu0 %v1507_v10  ;;  %897 = vmatpush.bf16.msra.mxu1 %v1511_v11  ;;  %v1122_v10 = vld [vmem:[%s2548_s1 + $0xa0] sm:$0xf] }
  0x46   :  { %910 = vmatpush.bf16.msra.mxu2 %v1515_v12  ;;  %879 = vmatmul.bf16.vlgmr.msrb.gmra.mxu3 %v1978_v1  ;;  %v1564_v11 = vld [vmem:[%s2548_s1 + $0xdc] sm:$0xf0]  ;;  %v1556_v12 = vld [vmem:[%s2548_s1 + $0xa4] sm:$0xf] }
  0x47   :  { %923 = vmatpush.bf16.msra.mxu3 %v1519_v16  ;;  %866 = vmatmul.bf16.vlgmr.msrb.gmra.mxu2 %v1978_v1  ;;  %v1565_v16 = vld [vmem:[%s2548_s1 + $0xe4] sm:$0xf0]  ;;  %v1123_v19 = vor.u32 %v1564_v11, %v1122_v10  ;;  %v1407_v10 = vor.u32 %v1623_v2, %v1404_v3  ;;  %v1332_v11 = vld [vmem:[%s2548_s1 + $0x270] sm:$0xf0] }
  0x49   :  { %885 = vmatpush.bf16.msra.mxu0 %v1443_v22  ;;  %898 = vmatpush.bf16.msra.mxu1 %v1447_v23  ;;  %v1127_v22 = vor.u32 %v1556_v12, %v1124_v14  ;;  %v1131_v23 = vor.u32 %v1565_v16, %v1130_v15  ;;  %v1338_v12 = vld [vmem:[%s2548_s1 + $0x238] sm:$0xf]  ;;  %v1607_v14 = vld [vmem:[%s2548_s1 + $0x23c] sm:$0xf] }
  0x4a   :  { %911 = vmatpush.bf16.msra.mxu2 %v1451_v24  ;;  %v1540_v24 = vld [vmem:[%s2548_s1 + $0x24] sm:$0xf]  ;;  %v1340_v15 = vld [vmem:[%s2548_s1 + $0x278] sm:$0xf0] }
  0x4b   :  { %924 = vmatpush.bf16.msra.mxu3 %v1455_v28  ;;  %v1549_v28 = vld [vmem:[%s2548_s1 + $0x64] sm:$0xf0]  ;;  %v1063_v38 = vor.u32 %v1540_v24, %v1060_v25  ;;  %v1274_v24 = vld [vmem:[%s2548_s1 + $0x1b8] sm:$0xf] }
  0x4c   :  { %v1067_v39 = vor.u32 %v1549_v28, %v1066_v26  ;;  %v1599_v25 = vld [vmem:[%s2548_s1 + $0x1f4] sm:$0xf0]  ;;  %v1591_v26 = vld [vmem:[%s2548_s1 + $0x1bc] sm:$0xf] }
  0x4d   :  { %886 = vmatpush.bf16.msra.mxu0 %v1379_v34  ;;  %899 = vmatpush.bf16.msra.mxu1 %v1383_v35  ;;  %v1059_v34 = vor.u32 %v1548_v21, %v1058_v20  ;;  %v1524_v35 = vld [vmem:[%s2548_s1 + $0x3f0] sm:$0xf0]  ;;  %v1598_v20 = vld [vmem:[%s2548_s1 + $0x1ec] sm:$0xf0]  ;;  %v1275_v30 = vor.u32 %v1599_v25, %v1274_v24 }
  0x4e   :  { %912 = vmatpush.bf16.msra.mxu2 %v1387_v36  ;;  %v1530_v36 = vld [vmem:[%s2548_s1 + $0x3b8] sm:$0xf]  ;;  %v1527_v44 = vor.u32 %v1654_v33, %v1524_v35  ;;  %v1590_v21 = vld [vmem:[%s2548_s1 + $0x1b4] sm:$0xf] }
  0x4f   :  { %925 = vmatpush.bf16.msra.mxu3 %v1391_v40  ;;  %v1655_v40 = vld [vmem:[%s2548_s1 + $0x3bc] sm:$0xf]  ;;  %v1531_v45 = vor.u32 %v1663_v37, %v1530_v36  ;;  %v1574_v33 = vld [vmem:[%s2548_s1 + $0x134] sm:$0xf]  ;;  %v1210_v36 = vld [vmem:[%s2548_s1 + $0x138] sm:$0xf] }
  0x50   :  { %v1535_v49 = vor.u32 %v1655_v40, %v1532_v41  ;;  %v1204_v35 = vld [vmem:[%s2548_s1 + $0x170] sm:$0xf0]  ;;  %v1583_v37 = vld [vmem:[%s2548_s1 + $0x174] sm:$0xf0]  ;;  %v1203_v40 = vor.u32 %v1582_v32, %v1202_v31 }
  0x51   :  { %887 = vmatpush.bf16.msra.mxu0 %v1315_v46  ;;  %900 = vmatpush.bf16.msra.mxu1 %v1319_v47  ;;  %v1458_v46 = vld [vmem:[%s2548_s1 + $0x330] sm:$0xf]  ;;  %v1207_v41 = vor.u32 %v1574_v33, %v1204_v35 }
  0x52   :  { %913 = vmatpush.bf16.msra.mxu2 %v1323_v48  ;;  %v1646_v47 = vld [vmem:[%s2548_s1 + $0x36c] sm:$0xf0]  ;;  %v1638_v48 = vld [vmem:[%s2548_s1 + $0x334] sm:$0xf] }
  0x53   :  { %926 = vmatpush.bf16.msra.mxu3 %v1327_v52  ;;  %v1647_v52 = vld [vmem:[%s2548_s1 + $0x374] sm:$0xf0]  ;;  %v1459_v55 = vor.u32 %v1646_v47, %v1458_v46  ;;  %v1463_v56 = vor.u32 %v1638_v48, %v1460_v50  ;;  %v1140_v47 = vld [vmem:[%s2548_s1 + $0xf0] sm:$0xf0]  ;;  %v1559_v50 = vld [vmem:[%s2548_s1 + $0xbc] sm:$0xf] }
  0x54   :  { %v1467_v57 = vor.u32 %v1647_v52, %v1466_v51  ;;  %v1146_v48 = vld [vmem:[%s2548_s1 + $0xb8] sm:$0xf]  ;;  %v1148_v51 = vld [vmem:[%s2548_s1 + $0xf8] sm:$0xf0] }
  0x55   :  { %888 = vmatpush.bf16.msra.mxu0 %v1251_v58  ;;  %901 = vmatpush.bf16.msra.mxu1 %v1255_v59  ;;  %v1394_v58 = vld [vmem:[%s2548_s1 + $0x2b0] sm:$0xf] }
  0x56   :  { %914 = vmatpush.bf16.msra.mxu2 %v1259_v60  ;;  %v1630_v59 = vld [vmem:[%s2548_s1 + $0x2ec] sm:$0xf0]  ;;  %v1622_v60 = vld [vmem:[%s2548_s1 + $0x2b4] sm:$0xf] }
  0x57   :  { %927 = vmatpush.bf16.msra.mxu3 %v1263_v0  ;;  %v1631_v0 = vld [vmem:[%s2548_s1 + $0x2f4] sm:$0xf0]  ;;  %v1395_v4 = vor.u32 %v1630_v59, %v1394_v58  ;;  %v1399_v5 = vor.u32 %v1622_v60, %v1396_v62  ;;  %v1151_v58 = vor.u32 %v1559_v50, %v1148_v51  ;;  %v1076_v59 = vld [vmem:[%s2548_s1 + $0x70] sm:$0xf0]  ;;  %v1543_v62 = vld [vmem:[%s2548_s1 + $0x3c] sm:$0xf] }
  0x58   :  { %v1403_v6 = vor.u32 %v1631_v0, %v1402_v63  ;;  %v1082_v60 = vld [vmem:[%s2548_s1 + $0x38] sm:$0xf]  ;;  %v1084_v63 = vld [vmem:[%s2548_s1 + $0x78] sm:$0xf0] }
  0x59   :  { %889 = vmatpush.bf16.msra.mxu0 %v1187_v7  ;;  %902 = vmatpush.bf16.msra.mxu1 %v1191_v8  ;;  %v1330_v7 = vld [vmem:[%s2548_s1 + $0x230] sm:$0xf] }
  0x5a   :  { %915 = vmatpush.bf16.msra.mxu2 %v1195_v9  ;;  %v1614_v8 = vld [vmem:[%s2548_s1 + $0x26c] sm:$0xf0]  ;;  %v1606_v9 = vld [vmem:[%s2548_s1 + $0x234] sm:$0xf] }
  0x5b   :  { %928 = vmatpush.bf16.msra.mxu3 %v1199_v13  ;;  %v1615_v13 = vld [vmem:[%s2548_s1 + $0x274] sm:$0xf0]  ;;  %v1331_v16 = vor.u32 %v1614_v8, %v1330_v7  ;;  %v1335_v17 = vor.u32 %v1606_v9, %v1332_v11 }
  0x5c   :  { %v1339_v18 = vor.u32 %v1615_v13, %v1338_v12 }
  0x5d   :  { %890 = vmatpush.bf16.msra.mxu0 %v1123_v19  ;;  %903 = vmatpush.bf16.msra.mxu1 %v1127_v22  ;;  %v1266_v19 = vld [vmem:[%s2548_s1 + $0x1b0] sm:$0xf]  ;;  %v1343_v22 = vor.u32 %v1607_v14, %v1340_v15 }
  0x5e   :  { %916 = vmatpush.bf16.msra.mxu2 %v1131_v23  ;;  %v1268_v23 = vld [vmem:[%s2548_s1 + $0x1f0] sm:$0xf0]  ;;  %v1267_v28 = vor.u32 %v1598_v20, %v1266_v19 }
  0x5f   :  { %929 = vmatpush.bf16.msra.mxu3 %v1135_v27  ;;  %v1276_v27 = vld [vmem:[%s2548_s1 + $0x1f8] sm:$0xf0]  ;;  %v1271_v29 = vor.u32 %v1590_v21, %v1268_v23 }
  0x61   :  { %891 = vmatpush.bf16.msra.mxu0 %v1059_v34  ;;  %904 = vmatpush.bf16.msra.mxu1 %v1063_v38  ;;  %v1279_v34 = vor.u32 %v1591_v26, %v1276_v27  ;;  %v1575_v38 = vld [vmem:[%s2548_s1 + $0x13c] sm:$0xf] }
  0x62   :  { %917 = vmatpush.bf16.msra.mxu2 %v1067_v39  ;;  %v1212_v39 = vld [vmem:[%s2548_s1 + $0x178] sm:$0xf0] }
  0x63   :  { %930 = vmatpush.bf16.msra.mxu3 %v1071_v42  ;;  %v1211_v42 = vor.u32 %v1583_v37, %v1210_v36  ;;  %v1215_v46 = vor.u32 %v1575_v38, %v1212_v39 }
  0x64   :  { %892 = vmatmul.bf16.vlgmr.msra.gmra.mxu0 %v1978_v1  ;;  %905 = vmatmul.bf16.vlgmr.msra.gmra.mxu1 %v1978_v1 }
  0x65   :  { %936 = vmatpush.bf16.msrb.mxu0 %v1523_v43  ;;  %949 = vmatpush.bf16.msrb.mxu1 %v1527_v44  ;;  %v1138_v43 = vld [vmem:[%s2548_s1 + $0xb0] sm:$0xf] }
  0x66   :  { %962 = vmatpush.bf16.msrb.mxu2 %v1531_v45  ;;  %931 = vmatmul.bf16.vlgmr.msra.gmra.mxu3 %v1978_v1  ;;  %v1566_v44 = vld [vmem:[%s2548_s1 + $0xec] sm:$0xf0]  ;;  %v1558_v45 = vld [vmem:[%s2548_s1 + $0xb4] sm:$0xf] }
  0x67   :  { %975 = vmatpush.bf16.msrb.mxu3 %v1535_v49  ;;  %918 = vmatmul.bf16.vlgmr.msra.gmra.mxu2 %v1978_v1  ;;  %v1567_v49 = vld [vmem:[%s2548_s1 + $0xf4] sm:$0xf0]  ;;  %v1139_v52 = vor.u32 %v1566_v44, %v1138_v43  ;;  %v1143_v53 = vor.u32 %v1558_v45, %v1140_v47 }
  0x68   :  { %v1147_v54 = vor.u32 %v1567_v49, %v1146_v48 }
  0x69   :  { %937 = vmatpush.bf16.msrb.mxu0 %v1459_v55  ;;  %950 = vmatpush.bf16.msrb.mxu1 %v1463_v56  ;;  %v1074_v55 = vld [vmem:[%s2548_s1 + $0x30] sm:$0xf] }
  0x6a   :  { %963 = vmatpush.bf16.msrb.mxu2 %v1467_v57  ;;  %v1550_v56 = vld [vmem:[%s2548_s1 + $0x6c] sm:$0xf0]  ;;  %v1542_v57 = vld [vmem:[%s2548_s1 + $0x34] sm:$0xf] }
  0x6b   :  { %976 = vmatpush.bf16.msrb.mxu3 %v1471_v61  ;;  %v1551_v61 = vld [vmem:[%s2548_s1 + $0x74] sm:$0xf0]  ;;  %v1075_v0 = vor.u32 %v1550_v56, %v1074_v55  ;;  %v1079_v2 = vor.u32 %v1542_v57, %v1076_v59 }
  0x6c   :  { %v1083_v3 = vor.u32 %v1551_v61, %v1082_v60 }
  0x6d   :  { %938 = vmatpush.bf16.msrb.mxu0 %v1395_v4  ;;  %951 = vmatpush.bf16.msrb.mxu1 %v1399_v5  ;;  %v1087_v4 = vor.u32 %v1543_v62, %v1084_v63 }
  0x6e   :  { %964 = vmatpush.bf16.msrb.mxu2 %v1403_v6 }
  0x6f   :  { %977 = vmatpush.bf16.msrb.mxu3 %v1407_v10 }
  0x71   :  { %939 = vmatpush.bf16.msrb.mxu0 %v1331_v16  ;;  %952 = vmatpush.bf16.msrb.mxu1 %v1335_v17 }
  0x72   :  { %965 = vmatpush.bf16.msrb.mxu2 %v1339_v18 }
  0x73   :  { %978 = vmatpush.bf16.msrb.mxu3 %v1343_v22 }
  0x75   :  { %940 = vmatpush.bf16.msrb.mxu0 %v1267_v28  ;;  %953 = vmatpush.bf16.msrb.mxu1 %v1271_v29 }
  0x76   :  { %966 = vmatpush.bf16.msrb.mxu2 %v1275_v30 }
  0x77   :  { %979 = vmatpush.bf16.msrb.mxu3 %v1279_v34 }
  0x79   :  { %941 = vmatpush.bf16.msrb.mxu0 %v1203_v40  ;;  %954 = vmatpush.bf16.msrb.mxu1 %v1207_v41 }
  0x7a   :  { %967 = vmatpush.bf16.msrb.mxu2 %v1211_v42 }
  0x7b   :  { %980 = vmatpush.bf16.msrb.mxu3 %v1215_v46 }
  0x7d   :  { %942 = vmatpush.bf16.msrb.mxu0 %v1139_v52  ;;  %955 = vmatpush.bf16.msrb.mxu1 %v1143_v53 }
  0x7e   :  { %968 = vmatpush.bf16.msrb.mxu2 %v1147_v54 }
  0x7f   :  { %981 = vmatpush.bf16.msrb.mxu3 %v1151_v58 }
  0x81   :  { %943 = vmatpush.bf16.msrb.mxu0 %v1075_v0  ;;  %956 = vmatpush.bf16.msrb.mxu1 %v1079_v2 }
  0x82   :  { %969 = vmatpush.bf16.msrb.mxu2 %v1083_v3 }
  0x83   :  { %982 = vmatpush.bf16.msrb.mxu3 %v1087_v4 }
  0x84   :  { %944 = vmatmul.bf16.vlgmr.msrb.gmra.mxu0 %v1978_v1  ;;  %957 = vmatmul.bf16.vlgmr.msrb.gmra.mxu1 %v1978_v1 }
  0x85   :  { %970 = vmatmul.bf16.vlgmr.msrb.gmra.mxu2 %v1978_v1 }
  0x86   :  { %983 = vmatmul.bf16.vlgmr.msrb.gmra.mxu3 %v1978_v1 }
  0xa1   :  { %v789_v5 = vpop.f32.mrf.mxu0  ;;  %v802_v6 = vpop.f32.mrf.mxu1 }
  0xa2   :  { %1664 = vtanh.f32 %v789_v5 }
  0xa3   :  { %1666 = vtanh.f32 %v802_v6 }
  0xa8   :  { %v1665_v9 = vpop.eup %1664 }
  0xa9   :  { %v828_v8 = vpop.f32.mrf.mxu3  ;;  %v1667_v10 = vpop.eup %1666  ;;  %1004 = vst [vmem:[%s2550_s2] sm:$0xff] %v1665_v9 }
  0xaa   :  { %v815_v7 = vpop.f32.mrf.mxu2  ;;  %v791_v11 = vpop.f32.mrf.mxu0  ;;  %1005 = vst [vmem:[%s2550_s2 + $0x8] sm:$0xff] %v1667_v10 }
  0xab   :  { %1668 = vtanh.f32 %v815_v7  ;;  %v804_v1 = vpop.f32.mrf.mxu1 }
  0xac   :  { %1670 = vtanh.f32 %v828_v8 }
  0xb1   :  { %v1669_v12 = vpop.eup %1668  ;;  %v830_v15 = vpop.f32.mrf.mxu3 }
  0xb2   :  { %v1671_v13 = vpop.eup %1670  ;;  %1006 = vst [vmem:[%s2550_s2 + $0x10] sm:$0xff] %v1669_v12  ;;  %v817_v14 = vpop.f32.mrf.mxu2 }
  0xb3   :  { %1007 = vst [vmem:[%s2550_s2 + $0x18] sm:$0xff] %v1671_v13 }
  0xc1   :  { %v841_v16 = vpop.f32.mrf.mxu0  ;;  %v854_v17 = vpop.f32.mrf.mxu1 }
  0xc2   :  { %1672 = vtanh.f32 %v841_v16 }
  0xc3   :  { %1674 = vtanh.f32 %v854_v17 }
  0xc8   :  { %v1673_v20 = vpop.eup %1672 }
  0xc9   :  { %v880_v19 = vpop.f32.mrf.mxu3  ;;  %v1675_v21 = vpop.eup %1674  ;;  %1008 = vst [vmem:[%s2550_s2 + $0x20] sm:$0xff] %v1673_v20 }
  0xca   :  { %v867_v18 = vpop.f32.mrf.mxu2  ;;  %v843_v22 = vpop.f32.mrf.mxu0  ;;  %1009 = vst [vmem:[%s2550_s2 + $0x28] sm:$0xff] %v1675_v21 }
  0xcb   :  { %1676 = vtanh.f32 %v867_v18  ;;  %v856_v23 = vpop.f32.mrf.mxu1 }
  0xcc   :  { %1678 = vtanh.f32 %v880_v19 }
  0xd1   :  { %v1677_v24 = vpop.eup %1676  ;;  %v882_v27 = vpop.f32.mrf.mxu3 }
  0xd2   :  { %v1679_v25 = vpop.eup %1678  ;;  %1010 = vst [vmem:[%s2550_s2 + $0x30] sm:$0xff] %v1677_v24  ;;  %v869_v26 = vpop.f32.mrf.mxu2 }
  0xd3   :  { %1011 = vst [vmem:[%s2550_s2 + $0x38] sm:$0xff] %v1679_v25 }
  0xe1   :  { %v893_v28 = vpop.f32.mrf.mxu0  ;;  %v906_v29 = vpop.f32.mrf.mxu1 }
  0xe2   :  { %1680 = vtanh.f32 %v893_v28 }
  0xe3   :  { %1682 = vtanh.f32 %v906_v29 }
  0xe8   :  { %v1681_v32 = vpop.eup %1680 }
  0xe9   :  { %v932_v31 = vpop.f32.mrf.mxu3  ;;  %v1683_v33 = vpop.eup %1682  ;;  %1012 = vst [vmem:[%s2550_s2 + $0x40] sm:$0xff] %v1681_v32 }
  0xea   :  { %v919_v30 = vpop.f32.mrf.mxu2  ;;  %v895_v34 = vpop.f32.mrf.mxu0  ;;  %1013 = vst [vmem:[%s2550_s2 + $0x48] sm:$0xff] %v1683_v33 }
  0xeb   :  { %1684 = vtanh.f32 %v919_v30  ;;  %v908_v35 = vpop.f32.mrf.mxu1 }
  0xec   :  { %1686 = vtanh.f32 %v932_v31 }
  0xf1   :  { %v1685_v36 = vpop.eup %1684  ;;  %v934_v39 = vpop.f32.mrf.mxu3 }
  0xf2   :  { %v1687_v37 = vpop.eup %1686  ;;  %1014 = vst [vmem:[%s2550_s2 + $0x50] sm:$0xff] %v1685_v36  ;;  %v921_v38 = vpop.f32.mrf.mxu2 }
  0xf3   :  { %1015 = vst [vmem:[%s2550_s2 + $0x58] sm:$0xff] %v1687_v37 }
 0x101   :  { %v945_v40 = vpop.f32.mrf.mxu0  ;;  %v958_v41 = vpop.f32.mrf.mxu1 }
 0x102   :  { %1688 = vtanh.f32 %v945_v40 }
 0x103   :  { %1690 = vtanh.f32 %v958_v41 }
 0x108   :  { %v1689_v42 = vpop.eup %1688  ;;  %v971_v43 = vpop.f32.mrf.mxu2 }
 0x109   :  { %v1691_v44 = vpop.eup %1690  ;;  %1016 = vst [vmem:[%s2550_s2 + $0x60] sm:$0xff] %v1689_v42  ;;  %1692 = vtanh.f32 %v971_v43  ;;  %v984_v45 = vpop.f32.mrf.mxu3 }
 0x10a   :  { %v947_v46 = vpop.f32.mrf.mxu0  ;;  %1017 = vst [vmem:[%s2550_s2 + $0x68] sm:$0xff] %v1691_v44  ;;  %1694 = vtanh.f32 %v984_v45  ;;  %v960_v47 = vpop.f32.mrf.mxu1 }
 0x10f   :  { %v1693_v48 = vpop.eup %1692 }
 0x110   :  { %v1695_v49 = vpop.eup %1694  ;;  %1018 = vst [vmem:[%s2550_s2 + $0x70] sm:$0xff] %v1693_v48  ;;  %v973_v50 = vpop.f32.mrf.mxu2 }
 0x111   :  { %1019 = vst [vmem:[%s2550_s2 + $0x78] sm:$0xff] %v1695_v49  ;;  %v986_v51 = vpop.f32.mrf.mxu3 }

</bundles_post_ra>
